<compile_context>
chip_gen: v7x
topology: tpu7x:2x2x1
jax: 0.10.0
libtpu: 0.0.40
codegen_flags: <defaults>
</compile_context>

<pallas_src>
from functools import partial

import jax
import jax.numpy as jnp
from jax.experimental import pallas as pl
from jax.experimental.pallas import tpu as pltpu


# ----------------------------- module config --------------------------------
def ffn_hidden_dim(hidden_dim, multiple_of, ffn_dim_multiplier):
    """Replicates the hidden-dim arithmetic in FeedForward.__init__."""
    hidden_dim = int(2 * hidden_dim / 3)
    if ffn_dim_multiplier is not None:
        hidden_dim = int(ffn_dim_multiplier * hidden_dim)
    return multiple_of * ((hidden_dim + multiple_of - 1) // multiple_of)


# ------------------------ chip-aware tiling helpers --------------------------
def _vmem_capacity_bytes():
    """Physical VMEM per core; falls back to 128 MiB (v5e/v6e) if unqueryable."""
    try:
        return int(pltpu.get_tpu_info().vmem_capacity_bytes)
    except Exception:
        return 128 << 20


def _pick_tile(total, preferred, aligns):
    """Largest t <= preferred with t % align == 0 and total % t == 0 (trying the
    alignments in order); falls back to the full dim (always a legal block)."""
    for align in aligns:
        t = min(preferred, total)
        t = (t // align) * align
        while t >= align:
            if total % t == 0:
                return t
            t -= align
    return total


def select_hidden_tile(Hd, *, th=None):
    """Hidden (reduction) tile: K of the 2nd matmul. Prefer multiples of 256 so
    the 256-wide MXU on v6e/v7x is filled; smaller default on v7x (64 MiB VMEM)."""
    if th is None:
        th = 512 if _vmem_capacity_bytes() > (64 << 20) else 256
    return _pick_tile(Hd, th, (256, 128))


def _select_token_tile(M, D, th, tm_pref, vmem_cap):
    """Token tile: primary weight-reuse knob. 128-aligned (bf16 sublane packing
    + native MXU LHS); shrunk only if the double-buffered footprint won't fit."""
    budget = min(int(0.75 * vmem_cap), 100 << 20)

    def footprint(tm):
        # double-buffered x(bf16) + w13(bf16) + w2t(bf16) + out(f32) blocks,
        # plus the resident f32 accumulator.
        return 2 * (tm * D * 2 + D * (2 * th) * 2 + th * D * 2 + tm * D * 4) + tm * D * 4

    tm = _pick_tile(M, tm_pref, (128, 16, 8))
    while footprint(tm) > budget and tm > 128:
        new_tm = _pick_tile(M, max(tm // 2, 128), (128, 16, 8))
        if new_tm >= tm:
            break
        tm = new_tm

    # v7x: 2 TensorCores/chip share the "parallel" grid axis -> keep >= 2 steps
    # on it when there is enough work, otherwise one core idles.
    if vmem_cap <= (64 << 20) and M >= 512 and M // tm < 2:
        tm = _pick_tile(M, M // 2, (128, 16, 8))

    return tm, budget, footprint(tm)


# ------------------------------ weight prep ----------------------------------
def prepare_ffn_weights(w1, w2, w3, *, th):
    """One-time (init-time) layout plumbing:
      * transpose to (K, N): native MXU feed, lane-dense matmul outputs
      * interleave w1/w3 columns per hidden tile -> ONE wide matmul per tile
        produces both SwiGLU halves
      * cast to bf16 (accumulation stays f32 inside the kernel)
    Cache the result; do NOT rebuild it on every forward call."""
    Hd, D = w1.shape
    nj = Hd // th
    w1_t = w1.T.astype(jnp.bfloat16)                       # (D, Hd)
    w3_t = w3.T.astype(jnp.bfloat16)                       # (D, Hd)
    w13 = jnp.concatenate(
        [w1_t.reshape(D, nj, th), w3_t.reshape(D, nj, th)], axis=2
    ).reshape(D, 2 * Hd)                                   # tile j columns = [w1_j | w3_j]
    w2_t = w2.T.astype(jnp.bfloat16)                       # (Hd, D)
    return w13, w2_t


# ------------------------------- kernel --------------------------------------
def _ffn_kernel(x_ref, w13_ref, w2t_ref, o_ref, acc_ref, *, th):
    # grid = (M//tm, Hd//th); axis 1 (hidden dim) is the reduction axis.
    j = pl.program_id(1)

    @pl.when(j == 0)
    def _():
        acc_ref[...] = jnp.zeros_like(acc_ref)

    # x is already bf16 (cast once in the wrapper, not per reduction step).
    # One wide matmul produces both gate halves: w13 tile columns are [w1_j | w3_j].
    h = jnp.dot(x_ref[...], w13_ref[...],
                preferred_element_type=jnp.float32)        # (tm, 2*th)  f32
    h1 = h[:, :th]
    h3 = h[:, th:]
    g = (h1 * jax.nn.sigmoid(h1)) * h3                     # SwiGLU gate in f32 (EUP sigmoid)
    acc_ref[...] += jnp.dot(g.astype(jnp.bfloat16), w2t_ref[...],
                            preferred_element_type=jnp.float32)   # (tm, D) f32 accumulate

    @pl.when(j == pl.num_programs(1) - 1)
    def _():
        o_ref[...] = acc_ref[...].astype(o_ref.dtype)


# ------------------------------- wrappers -------------------------------------
def feed_forward_prepared(x, w13, w2_t, *, th, tm=None):
    """x: (..., D).  w13: (D, 2*Hd) interleaved per hidden tile, w2_t: (Hd, D),
    both bf16 (from prepare_ffn_weights)."""
    orig_shape = x.shape
    D = orig_shape[-1]
    Hd = w2_t.shape[0]
    x2 = x.reshape(-1, D)
    M = x2.shape[0]
    nj = Hd // th

    vmem_cap = _vmem_capacity_bytes()
    if tm is None:
        tm = 512                                            # primary sweep knob
    tm, budget, need = _select_token_tile(M, D, th, tm, vmem_cap)
    vmem_limit = int(min(max(int(1.25 * need), 32 << 20), budget))

    # Cast x to bf16 once here: halves the x DMA bytes and removes the per-step
    # in-kernel VPU cast (the x tile is resident across all nj reduction steps).
    x_bf16 = x2.astype(jnp.bfloat16)

    out = pl.pallas_call(
        partial(_ffn_kernel, th=th),
        out_shape=jax.ShapeDtypeStruct((M, D), x.dtype),
        grid_spec=pltpu.PrefetchScalarGridSpec(
            num_scalar_prefetch=0,
            grid=(M // tm, nj),                             # reduction axis last
            in_specs=[
                pl.BlockSpec((tm, D), lambda i, j: (i, 0)),        # x tile (resident over j)
                pl.BlockSpec((D, 2 * th), lambda i, j: (0, j)),    # fused [w1|w3] tile
                pl.BlockSpec((th, D), lambda i, j: (j, 0)),        # w2^T tile
            ],
            out_specs=pl.BlockSpec((tm, D), lambda i, j: (i, 0)),  # resident across j
            scratch_shapes=[pltpu.VMEM((tm, D), jnp.float32)],
        ),
        compiler_params=pltpu.CompilerParams(
            dimension_semantics=("parallel", "arbitrary"),
            vmem_limit_bytes=vmem_limit),
    )(x_bf16, w13, w2_t)
    return out.reshape(orig_shape)


def feed_forward(x, w1, w2, w3, *, tm=None, th=None):
    """Convenience path (PyTorch nn.Linear weight layout). In real use, run
    prepare_ffn_weights ONCE at init and call feed_forward_prepared directly."""
    th = select_hidden_tile(w1.shape[0], th=th)
    w13, w2_t = prepare_ffn_weights(w1, w2, w3, th=th)
    return feed_forward_prepared(x, w13, w2_t, th=th, tm=tm)


def feed_forward_ref(x, w1, w2, w3):
    """Pure-JAX f32 reference, identical math to the PyTorch module."""
    h1 = jnp.einsum("...d,hd->...h", x, w1)
    h3 = jnp.einsum("...d,hd->...h", x, w3)
    return jnp.einsum("...h,dh->...d", jax.nn.silu(h1) * h3, w2)


# --------------------------------- main ---------------------------------------
if __name__ == "__main__":
    dim = 128
    hidden_in = 4 * dim          # as passed to FeedForward(hidden_dim=4*dim, ...)
    multiple_of = 128
    ffn_dim_multiplier = None
    B, S = 2, 64

    Hd = ffn_hidden_dim(hidden_in, multiple_of, ffn_dim_multiplier)   # 384

    key = jax.random.PRNGKey(0)
    kx, k1, k2, k3 = jax.random.split(key, 4)
    x = jax.random.normal(kx, (B, S, dim), dtype=jnp.float32)
    # PyTorch nn.Linear layout: (out_features, in_features), no bias.
    w1 = 0.02 * jax.random.normal(k1, (Hd, dim), dtype=jnp.float32)
    w2 = 0.02 * jax.random.normal(k2, (dim, Hd), dtype=jnp.float32)
    w3 = 0.02 * jax.random.normal(k3, (Hd, dim), dtype=jnp.float32)

    # Weight prep runs ONCE (module-init analogue), not on every forward call.
    th = select_hidden_tile(Hd)
    w13, w2_t = prepare_ffn_weights(w1, w2, w3, th=th)
    w13, w2_t = jax.block_until_ready((w13, w2_t))

    out = feed_forward_prepared(x, w13, w2_t, th=th)
    jax.block_until_ready(out)
    assert out.shape == x.shape and out.dtype == x.dtype

    ref = feed_forward_ref(x, w1, w2, w3)
    rel_err = float(jnp.max(jnp.abs(out - ref)) / (jnp.max(jnp.abs(ref)) + 1e-12))
    assert rel_err < 5e-2, f"relative error too large: {rel_err}"

    print("KERNEL_OK")
</pallas_src>

<mosaic_0001>
module attributes {stable_mosaic.version = 11 : i64} {
  func.func @_ffn_kernel(%arg0: i32, %arg1: i32, %arg2: memref<128x128xbf16, #tpu.memory_space<vmem>>, %arg3: memref<128x768xbf16, #tpu.memory_space<vmem>>, %arg4: memref<384x128xbf16, #tpu.memory_space<vmem>>, %arg5: memref<128x128xf32, #tpu.memory_space<vmem>>, %arg6: memref<128x128xf32, #tpu.memory_space<vmem>>) attributes {dimension_semantics = [#tpu.dimension_semantics<parallel>, #tpu.dimension_semantics<arbitrary>], iteration_bounds = array<i64: 1, 1>, scalar_prefetch = 0 : i64, scratch_operands = 1 : i64, tpu.core_type = #tpu.core_type<tc>, window_params = [{transform_indices = @transform_0, window_bounds = array<i64: 128, 128>}, {transform_indices = @transform_1, window_bounds = array<i64: 128, 768>}, {transform_indices = @transform_2, window_bounds = array<i64: 384, 128>}, {transform_indices = @transform_3, window_bounds = array<i64: 128, 128>}]} {
    %c0_i32 = arith.constant 0 : i32
    %0 = arith.cmpi eq, %arg1, %c0_i32 : i32
    %1 = arith.extui %0 : i1 to i32
    %c0_i32_0 = arith.constant 0 : i32
    %2 = arith.cmpi ne, %1, %c0_i32_0 : i32
    scf.if %2 {
      %cst_14 = arith.constant 0.000000e+00 : f32
      %24 = vector.broadcast %cst_14 : f32 to vector<128x128xf32>
      %c0_15 = arith.constant 0 : index
      %c0_16 = arith.constant 0 : index
      %25 = vector.load %arg6[%c0_15, %c0_16] : memref<128x128xf32, #tpu.memory_space<vmem>>, vector<128x128xf32>
      tpu.vector_store %arg6[%c0_15, %c0_16], %24 {strides = array<i32>} : memref<128x128xf32, #tpu.memory_space<vmem>>, vector<128x128xf32>,
    } else {
    }
    %c0 = arith.constant 0 : index
    %c0_1 = arith.constant 0 : index
    %3 = vector.load %arg2[%c0, %c0_1] : memref<128x128xbf16, #tpu.memory_space<vmem>>, vector<128x128xbf16>
    %c0_2 = arith.constant 0 : index
    %c0_3 = arith.constant 0 : index
    %4 = vector.load %arg3[%c0_2, %c0_3] : memref<128x768xbf16, #tpu.memory_space<vmem>>, vector<128x768xbf16>
    %cst = arith.constant dense<0.000000e+00> : vector<128x768xf32>
    %5 = tpu.matmul %3, %4, %cst {dimension_numbers = #tpu.dot_dimension_numbers<[1], [0], [0], [1], [0, 0, 1, 1], [], []>} : vector<128x128xbf16>, vector<128x768xbf16>, vector<128x768xf32> -> vector<128x768xf32>
    %6 = vector.extract_strided_slice %5 {offsets = [0, 0], sizes = [128, 384], strides = [1, 1]} : vector<128x768xf32> to vector<128x384xf32>
    %7 = vector.extract_strided_slice %5 {offsets = [0, 384], sizes = [128, 384], strides = [1, 1]} : vector<128x768xf32> to vector<128x384xf32>
    %8 = arith.negf %6 : vector<128x384xf32>
    %9 = math.exp %8 : vector<128x384xf32>
    %cst_4 = arith.constant 1.000000e+00 : f32
    %10 = vector.broadcast %cst_4 : f32 to vector<128x384xf32>
    %11 = arith.addf %10, %9 : vector<128x384xf32>
    %12 = arith.divf %10, %11 : vector<128x384xf32>
    %13 = arith.mulf %6, %12 : vector<128x384xf32>
    %14 = arith.mulf %13, %7 : vector<128x384xf32>
    %c0_5 = arith.constant 0 : index
    %c0_6 = arith.constant 0 : index
    %15 = vector.load %arg6[%c0_5, %c0_6] : memref<128x128xf32, #tpu.memory_space<vmem>>, vector<128x128xf32>
    %16 = arith.truncf %14 : vector<128x384xf32> to vector<128x384xbf16>
    %c0_7 = arith.constant 0 : index
    %c0_8 = arith.constant 0 : index
    %17 = vector.load %arg4[%c0_7, %c0_8] : memref<384x128xbf16, #tpu.memory_space<vmem>>, vector<384x128xbf16>
    %cst_9 = arith.constant dense<0.000000e+00> : vector<128x128xf32>
    %18 = tpu.matmul %16, %17, %cst_9 {dimension_numbers = #tpu.dot_dimension_numbers<[1], [0], [0], [1], [0, 0, 1, 1], [], []>} : vector<128x384xbf16>, vector<384x128xbf16>, vector<128x128xf32> -> vector<128x128xf32>
    %19 = arith.addf %15, %18 : vector<128x128xf32>
    %c0_10 = arith.constant 0 : index
    %c0_11 = arith.constant 0 : index
    %20 = vector.load %arg6[%c0_10, %c0_11] : memref<128x128xf32, #tpu.memory_space<vmem>>, vector<128x128xf32>
    tpu.vector_store %arg6[%c0_10, %c0_11], %19 {strides = array<i32>} : memref<128x128xf32, #tpu.memory_space<vmem>>, vector<128x128xf32>,
    %c0_i32_12 = arith.constant 0 : i32
    %21 = arith.cmpi eq, %arg1, %c0_i32_12 : i32
    %22 = arith.extui %21 : i1 to i32
    %c0_i32_13 = arith.constant 0 : i32
    %23 = arith.cmpi ne, %22, %c0_i32_13 : i32
    scf.if %23 {
      %c0_14 = arith.constant 0 : index
      %c0_15 = arith.constant 0 : index
      %24 = vector.load %arg6[%c0_14, %c0_15] : memref<128x128xf32, #tpu.memory_space<vmem>>, vector<128x128xf32>
      %c0_16 = arith.constant 0 : index
      %c0_17 = arith.constant 0 : index
      %25 = vector.load %arg5[%c0_16, %c0_17] : memref<128x128xf32, #tpu.memory_space<vmem>>, vector<128x128xf32>
      tpu.vector_store %arg5[%c0_16, %c0_17], %24 {strides = array<i32>} : memref<128x128xf32, #tpu.memory_space<vmem>>, vector<128x128xf32>,
    } else {
    }
    return
  }
  func.func @transform_0(%arg0: i32, %arg1: i32) -> (i32, i32) {
    %c0_i32 = arith.constant 0 : i32
    %c0_i32_0 = arith.constant 0 : i32
    return %arg0, %c0_i32 : i32, i32
  }
  func.func @transform_1(%arg0: i32, %arg1: i32) -> (i32, i32) {
    %c0_i32 = arith.constant 0 : i32
    %c0_i32_0 = arith.constant 0 : i32
    return %c0_i32, %arg1 : i32, i32
  }
  func.func @transform_2(%arg0: i32, %arg1: i32) -> (i32, i32) {
    %c0_i32 = arith.constant 0 : i32
    %c0_i32_0 = arith.constant 0 : i32
    return %arg1, %c0_i32 : i32, i32
  }
  func.func @transform_3(%arg0: i32, %arg1: i32) -> (i32, i32) {
    %c0_i32 = arith.constant 0 : i32
    %c0_i32_0 = arith.constant 0 : i32
    return %arg0, %c0_i32 : i32, i32
  }
}

</mosaic_0001>

<bundles_post_ra>
// kernel: tpu_custom_call.1
= control target key start
LH: loop header
LB: loop body
LE: loop exit
PB: predicated region body
PF: predicated region fallthrough
CT: control target
= control target key end

     0   :  { %8 = vsyncpa [#allocation4], 0  ;;  %s2835_s0 = inlined_call_operand.hbm [shape: bf16[128,128], index: 0, kind: input, shape index: {}]   ;;  %s2836_s1 = inlined_call_operand.hbm [shape: bf16[128,768], index: 1, kind: input, shape index: {}]   ;;  %s2837_s2 = inlined_call_operand.hbm [shape: bf16[384,128], index: 2, kind: input, shape index: {}]   ;;  %s2838_s3 = inlined_call_operand.hbm [shape: f32[128,128], index: 3, kind: output, shape index: {}]  }
   0x1   :  { %9 = vsyncpa [#allocation7], 0 }
   0x2   :  { %10 = vsyncpa [#allocation5], 0  ;;  %s2320_s12 = smov [#allocation6]   ;;  %s2226_s16 = scalar_lea.hbm %s2836_s1, 6144 }
   0x3   :  { %s28_s13 = sshll.u32 %s2320_s12, 4  ;;  %p2227_p0 = scmp.ne.s32.totalorder %s2836_s1, %s2226_s16  ;;  %s29_s13 = int_to_ptr.vmem [resolvable:$true] %s28_s13 }
   0x4   :  { %p2230_p1 = scmp.lt.u32.totalorder %s2226_s16, %s2836_s1 }
   0x6   :  { %p2232_p2 = pnand %p2230_p1, %p2227_p0 }
   0x8   :  { %2235 = shalt.err (!%p2232_p2)
}
   0x9   :  { %s2236_s21 = scalar_lea.vmem %s29_s13, 6144  ;;  %p2241_p4 = scmp.lt.s32.totalorder %s29_s13, %s29_s13 }
   0xa   :  { %p2237_p3 = scmp.ne.s32.totalorder %s29_s13, %s2236_s21  ;;  %p2242_p5 = scmp.lt.s32.totalorder %s2236_s21, %s2236_s21 }
   0xc   :  { %p2243_p6 = por %p2242_p5, %p2241_p4 }
   0xe   :  { %p2244_p7 = pnand %p2243_p6, %p2237_p3 }
  0x10   :  { %2247 = shalt.err (!%p2244_p7)
}
  0x11   :  { %s2321_s22 = smov 384   ;;  %s2322_s23 = smov 24  }
  0x12   :  { %34 = dma.hbm_to_vmem [thread:$0]  %s2836_s1, 6144, %s29_s13, [#allocation7], %s2321_s22, %s2321_s22, %s2322_s23  }
  0x13   :  { %s2323_s26 = smov [#allocation3]   ;;  %s2248_s30 = scalar_lea.hbm %s2835_s0, 1024 }
  0x14   :  { %s16_s27 = sshll.u32 %s2323_s26, 4  ;;  %p2249_p8 = scmp.ne.s32.totalorder %s2835_s0, %s2248_s30  ;;  %s17_s27 = int_to_ptr.vmem [resolvable:$true] %s16_s27 }
  0x15   :  { %p2252_p9 = scmp.lt.u32.totalorder %s2248_s30, %s2835_s0 }
  0x17   :  { %p2254_p10 = pnand %p2252_p9, %p2249_p8 }
  0x19   :  { %2257 = shalt.err (!%p2254_p10)
}
  0x1a   :  { %s2258_s8 = scalar_lea.vmem %s17_s27, 1024  ;;  %p2263_p12 = scmp.lt.s32.totalorder %s17_s27, %s17_s27 }
  0x1b   :  { %p2259_p11 = scmp.ne.s32.totalorder %s17_s27, %s2258_s8  ;;  %p2264_p13 = scmp.lt.s32.totalorder %s2258_s8, %s2258_s8 }
  0x1d   :  { %p2265_p0 = por %p2264_p13, %p2263_p12 }
  0x1f   :  { %p2266_p1 = pnand %p2265_p0, %p2259_p11 }
  0x21   :  { %2269 = shalt.err (!%p2266_p1)
}
  0x22   :  { %s2324_s1 = smov 64   ;;  %s2325_s9 = smov 4  }
  0x23   :  { %22 = dma.hbm_to_vmem [thread:$0]  %s2835_s0, 1024, %s17_s27, [#allocation4], %s2324_s1, %s2324_s1, %s2325_s9  }
  0x24   :  { %s2326_s12 = smov [#allocation8]   ;;  %s2270_s16 = scalar_lea.hbm %s2837_s2, 3072 }
  0x25   :  { %s40_s13 = sshll.u32 %s2326_s12, 4  ;;  %p2271_p2 = scmp.ne.s32.totalorder %s2837_s2, %s2270_s16  ;;  %s41_s13 = int_to_ptr.vmem [resolvable:$true] %s40_s13 }
  0x26   :  { %p2274_p3 = scmp.lt.u32.totalorder %s2270_s16, %s2837_s2 }
  0x28   :  { %p2276_p4 = pnand %p2274_p3, %p2271_p2 }
  0x2a   :  { %2279 = shalt.err (!%p2276_p4)
}
  0x2b   :  { %s2280_s21 = scalar_lea.vmem %s41_s13, 3072  ;;  %p2285_p6 = scmp.lt.s32.totalorder %s41_s13, %s41_s13 }
  0x2c   :  { %p2281_p5 = scmp.ne.s32.totalorder %s41_s13, %s2280_s21  ;;  %p2286_p7 = scmp.lt.s32.totalorder %s2280_s21, %s2280_s21 }
  0x2e   :  { %p2287_p8 = por %p2286_p7, %p2285_p6 }
  0x30   :  { %p2288_p9 = pnand %p2287_p8, %p2281_p5 }
  0x32   :  { %2291 = shalt.err (!%p2288_p9)
}
  0x33   :  { %46 = dma.hbm_to_vmem [thread:$0]  %s2837_s2, 3072, %s41_s13, [#allocation7], %s2324_s1, %s2324_s1, %s2325_s9  }
  0x34   :  { %2314 = dma.done.wait [#allocation4], 1024  }
  0x35   :  { %2315 = vsyncadd [#allocation4], 4294966272 }
  0x36   :  { %2316 = dma.done.wait [#allocation7], 9216  }
  0x37   :  { %2317 = vsyncadd [#allocation7], 4294958080  ;;  %v2327_v0 = vmov 0   ;;  %v1930_v1 = vld [vmem:[#allocation6 + $0x4] ss:$24 sps:$4 sm:$0xff]   ;;  %v2393_v39 = vld [vmem:[#allocation3 + $0x8] sm:$0xff]  }
  0x38   :  { %461 = vmatprep.mubr.bf16.mxu0 %v2327_v0  ;;  %574 = vmatprep.mubr.bf16.mxu1 %v2327_v0  ;;  %v1932_v2 = vld [vmem:[#allocation6] ss:$24 sps:$4 sm:$0xff]   ;;  %v1933_v3 = vld [vmem:[#allocation6 + $0x34] ss:$24 sps:$4 sm:$0xff]   ;;  %v1935_v4 = vld [vmem:[#allocation6 + $0x30] ss:$24 sps:$4 sm:$0xff]  }
  0x39   :  { %429 = vmatprep.subr.bf16.mxu0 %v1930_v1  ;;  %v1936_v5 = vld [vmem:[#allocation6 + $0x64] ss:$24 sps:$4 sm:$0xff]   ;;  %v1938_v6 = vld [vmem:[#allocation6 + $0x60] ss:$24 sps:$4 sm:$0xff]   ;;  %v1939_v7 = vld [vmem:[#allocation6 + $0x94] ss:$24 sps:$4 sm:$0xff]  }
  0x3a   :  { %430 = vmatpush1.bf16.msra.mxu0 %v1932_v2  ;;  %v1951_v8 = vld [vmem:[#allocation6 + $0xc] ss:$24 sps:$4 sm:$0xff]   ;;  %v1953_v9 = vld [vmem:[#allocation6 + $0x8] ss:$24 sps:$4 sm:$0xff]   ;;  %v1957_v12 = vld [vmem:[#allocation6 + $0x3c] ss:$24 sps:$4 sm:$0xff]  }
  0x3b   :  { %431 = vmatprep.subr.bf16.mxu0 %v1933_v3  ;;  %v1941_v10 = vld [vmem:[#allocation6 + $0x90] ss:$24 sps:$4 sm:$0xff]   ;;  %v1942_v11 = vld [vmem:[#allocation6 + $0xc4] ss:$24 sps:$4 sm:$0xff]   ;;  %542 = vmatprep.subr.bf16.mxu1 %v1951_v8  ;;  %v1944_v14 = vld [vmem:[#allocation6 + $0xc0] ss:$24 sps:$4 sm:$0xff]  }
  0x3c   :  { %543 = vmatpush1.bf16.msra.mxu1 %v1953_v9  ;;  %v1959_v13 = vld [vmem:[#allocation6 + $0x38] ss:$24 sps:$4 sm:$0xff]   ;;  %v1945_v15 = vld [vmem:[#allocation6 + $0xf4] ss:$24 sps:$4 sm:$0xff]   ;;  %v1966_v17 = vld [vmem:[#allocation6 + $0x68] ss:$24 sps:$4 sm:$0xff]  }
  0x3d   :  { %544 = vmatprep.subr.bf16.mxu1 %v1957_v12  ;;  %v1964_v16 = vld [vmem:[#allocation6 + $0x6c] ss:$24 sps:$4 sm:$0xff]   ;;  %v1967_v18 = vld [vmem:[#allocation6 + $0x9c] ss:$24 sps:$4 sm:$0xff]   ;;  %v1947_v19 = vld [vmem:[#allocation6 + $0xf0] ss:$24 sps:$4 sm:$0xff]  }
  0x3e   :  { %432 = vmatpush1.bf16.msra.mxu0 %v1935_v4  ;;  %v1948_v20 = vld [vmem:[#allocation6 + $0x124] ss:$24 sps:$4 sm:$0xff]   ;;  %v1969_v21 = vld [vmem:[#allocation6 + $0x98] ss:$24 sps:$4 sm:$0xff]   ;;  %v1954_v24 = vld [vmem:[#allocation6 + $0x154] ss:$24 sps:$4 sm:$0xff]  }
  0x3f   :  { %433 = vmatprep.subr.bf16.mxu0 %v1936_v5  ;;  %v1974_v22 = vld [vmem:[#allocation6 + $0xcc] ss:$24 sps:$4 sm:$0xff]   ;;  %v1950_v23 = vld [vmem:[#allocation6 + $0x120] ss:$24 sps:$4 sm:$0xff]   ;;  %v1977_v26 = vld [vmem:[#allocation6 + $0xfc] ss:$24 sps:$4 sm:$0xff]  }
  0x40   :  { %545 = vmatpush1.bf16.msra.mxu1 %v1959_v13  ;;  %v1976_v25 = vld [vmem:[#allocation6 + $0xc8] ss:$24 sps:$4 sm:$0xff]   ;;  %v1963_v28 = vld [vmem:[#allocation6 + $0x14] ss:$24 sps:$4 sm:$0xff]   ;;  %v1979_v29 = vld [vmem:[#allocation6 + $0xf8] ss:$24 sps:$4 sm:$0xff]  }
  0x41   :  { %546 = vmatprep.subr.bf16.mxu1 %v1964_v16  ;;  %v1956_v27 = vld [vmem:[#allocation6 + $0x150] ss:$24 sps:$4 sm:$0xff]   ;;  %v2389_v30 = vld [vmem:[#allocation3] sm:$0xff]   ;;  %v1987_v35 = vld [vmem:[#allocation6 + $0x15c] ss:$24 sps:$4 sm:$0xff]   ;;  %s2328_s2 = smov [#allocation9]  }
  0x42   :  { %434 = vmatpush1.bf16.msra.mxu0 %v1938_v6  ;;  %v1984_v31 = vld [vmem:[#allocation6 + $0x12c] ss:$24 sps:$4 sm:$0xff]   ;;  %v1961_v32 = vld [vmem:[#allocation6 + $0x10] ss:$24 sps:$4 sm:$0xff]   ;;  %v1971_v36 = vld [vmem:[#allocation6 + $0x40] ss:$24 sps:$4 sm:$0xff]  }
  0x43   :  { %435 = vmatprep.subr.bf16.mxu0 %v1939_v7  ;;  %v1973_v33 = vld [vmem:[#allocation6 + $0x44] ss:$24 sps:$4 sm:$0xff]   ;;  %v1986_v34 = vld [vmem:[#allocation6 + $0x128] ss:$24 sps:$4 sm:$0xff]   ;;  %v1983_v37 = vld [vmem:[#allocation6 + $0x74] ss:$24 sps:$4 sm:$0xff]  }
  0x44   :  { %547 = vmatpush1.bf16.msra.mxu1 %v1966_v17  ;;  %v1989_v38 = vld [vmem:[#allocation6 + $0x158] ss:$24 sps:$4 sm:$0xff]   ;;  %v1993_v41 = vld [vmem:[#allocation6 + $0xa4] ss:$24 sps:$4 sm:$0xff]   ;;  %v1997_v43 = vld [vmem:[#allocation6 + $0xd4] ss:$24 sps:$4 sm:$0xff]  }
  0x45   :  { %548 = vmatprep.subr.bf16.mxu1 %v1967_v18  ;;  %v1981_v40 = vld [vmem:[#allocation6 + $0x70] ss:$24 sps:$4 sm:$0xff]   ;;  %v1991_v42 = vld [vmem:[#allocation6 + $0xa0] ss:$24 sps:$4 sm:$0xff]   ;;  %v2001_v46 = vld [vmem:[#allocation6 + $0x104] ss:$24 sps:$4 sm:$0xff]  }
  0x46   :  { %436 = vmatpush1.bf16.msra.mxu0 %v1941_v10  ;;  %v1980_v44 = vld [vmem:[#allocation3 + $0x10] sm:$0xff]   ;;  %v1999_v47 = vld [vmem:[#allocation6 + $0x100] ss:$24 sps:$4 sm:$0xff]   ;;  %v2009_v51 = vld [vmem:[#allocation6 + $0x164] ss:$24 sps:$4 sm:$0xff]   ;;  %s1650_s23 = sshll.u32 %s2328_s2, 4  ;;  %s1651_s23 = int_to_ptr.vmem [resolvable:$true] %s1650_s23 }
  0x47   :  { %437 = vmatprep.subr.bf16.mxu0 %v1942_v11  ;;  %v1995_v45 = vld [vmem:[#allocation6 + $0xd0] ss:$24 sps:$4 sm:$0xff]   ;;  %v2005_v48 = vld [vmem:[#allocation6 + $0x134] ss:$24 sps:$4 sm:$0xff]   ;;  %v1990_v49 = vld [vmem:[#allocation3 + $0x18] sm:$0xff]   ;;  %s2292_s24 = scalar_lea.vmem %s1651_s23, 2048  ;;  %p2297_p11 = scmp.lt.s32.totalorder %s1651_s23, %s1651_s23 }
  0x48   :  { %549 = vmatpush1.bf16.msra.mxu1 %v1969_v21  ;;  %v2003_v50 = vld [vmem:[#allocation6 + $0x130] ss:$24 sps:$4 sm:$0xff]   ;;  %v2007_v52 = vld [vmem:[#allocation6 + $0x160] ss:$24 sps:$4 sm:$0xff]   ;;  %p2293_p10 = scmp.ne.s32.totalorder %s1651_s23, %s2292_s24  ;;  %p2298_p12 = scmp.lt.s32.totalorder %s2292_s24, %s2292_s24 }
  0x49   :  { %550 = vmatprep.subr.bf16.mxu1 %v1974_v22  ;;  %v1994_v53 = vld [vmem:[#allocation3 + $0x20] sm:$0xff]   ;;  %v1998_v54 = vld [vmem:[#allocation3 + $0x28] sm:$0xff]   ;;  %v2002_v55 = vld [vmem:[#allocation3 + $0x30] sm:$0xff]  }
  0x4a   :  { %438 = vmatpush1.bf16.msra.mxu0 %v1944_v14  ;;  %v2006_v56 = vld [vmem:[#allocation3 + $0x38] sm:$0xff]   ;;  %v2010_v57 = vld [vmem:[#allocation8 + $0x40] sm:$0xff]   ;;  %v2012_v59 = vld [vmem:[#allocation8 + $0x48] sm:$0xff]   ;;  %p2299_p13 = por %p2298_p12, %p2297_p11 }
  0x4b   :  { %439 = vmatprep.subr.bf16.mxu0 %v1945_v15  ;;  %v2011_v58 = vld [vmem:[#allocation8] sm:$0xff]   ;;  %v2013_v60 = vld [vmem:[#allocation8 + $0x8] sm:$0xff]   ;;  %v2014_v61 = vld [vmem:[#allocation8 + $0x50] sm:$0xff]  }
  0x4c   :  { %551 = vmatpush1.bf16.msra.mxu1 %v1976_v25  ;;  %v2015_v62 = vld [vmem:[#allocation8 + $0x10] sm:$0xff]   ;;  %v2016_v63 = vld [vmem:[#allocation8 + $0x58] sm:$0xff]   ;;  %v2421_v2 = vld [vmem:[#allocation8 + $0x80] sm:$0xff]   ;;  %p2300_p0 = pnand %p2299_p13, %p2293_p10 }
  0x4d   :  { %552 = vmatprep.subr.bf16.mxu1 %v1977_v26  ;;  %v2017_v1 = vld [vmem:[#allocation8 + $0x18] sm:$0xff]   ;;  %v2019_v3 = vld [vmem:[#allocation8 + $0x20] sm:$0xff]   ;;  %v2425_v4 = vld [vmem:[#allocation8 + $0x88] sm:$0xff]  }
  0x4e   :  { %440 = vmatpush1.bf16.msra.mxu0 %v1947_v19  ;;  %v2020_v5 = vld [vmem:[#allocation8 + $0x68] sm:$0xff]   ;;  %v2429_v7 = vld [vmem:[#allocation8 + $0x90] sm:$0xff]   ;;  %v2433_v8 = vld [vmem:[#allocation8 + $0x98] sm:$0xff]  }
  0x4f   :  { %441 = vmatprep.subr.bf16.mxu0 %v1948_v20  ;;  %v2022_v6 = vld [vmem:[#allocation8 + $0x28] sm:$0xff]   ;;  %2863 = vst [vmem:[#allocation13_spill] sm:$0xff] %v2433_v8  ;;  %v2024_v9 = vld [vmem:[#allocation8 + $0x70] sm:$0xff]   ;;  %v2437_v11 = vld [vmem:[#allocation8 + $0xa0] sm:$0xff]  }
  0x50   :  { %553 = vmatpush1.bf16.msra.mxu1 %v1979_v29  ;;  %v2026_v10 = vld [vmem:[#allocation8 + $0x30] sm:$0xff]   ;;  %2864 = vst [vmem:[#allocation14_spill] sm:$0xff] %v2437_v11  ;;  %v2028_v12 = vld [vmem:[#allocation8 + $0x78] sm:$0xff]   ;;  %v2441_v13 = vld [vmem:[#allocation8 + $0xa8] sm:$0xff]  }
  0x51   :  { %554 = vmatprep.subr.bf16.mxu1 %v1984_v31  ;;  %2865 = vst [vmem:[#allocation15_spill] sm:$0xff] %v2441_v13  ;;  %v2030_v14 = vld [vmem:[#allocation8 + $0x38] sm:$0xff]   ;;  %v2446_v15 = vld [vmem:[#allocation8 + $0xb0] sm:$0xff]  }
  0x52   :  { %442 = vmatpush1.bf16.msra.mxu0 %v1950_v23  ;;  %2866 = vst [vmem:[#allocation16_spill] sm:$0xff] %v2446_v15  ;;  %v2450_v16 = vld [vmem:[#allocation8 + $0xb8] sm:$0xff]  }
  0x53   :  { %443 = vmatprep.subr.bf16.mxu0 %v1954_v24  ;;  %2867 = vst [vmem:[#allocation17_spill] sm:$0xff] %v2450_v16 }
  0x54   :  { %555 = vmatpush1.bf16.msra.mxu1 %v1986_v34 }
  0x55   :  { %556 = vmatprep.subr.bf16.mxu1 %v1987_v35 }
  0x56   :  { %444 = vmatpush1.bf16.msra.mxu0 %v1956_v27 }
  0x57   :  { %655 = vmatprep.subr.bf16.mxu0 %v1963_v28 }
  0x58   :  { %557 = vmatpush1.bf16.msra.mxu1 %v1989_v38 }
  0x59   :  { %462 = vmatmul.mubr.bf16.vlgmr.msra.gmra.mrb[0].mxu0 %v2389_v30  ;;  %1791 = vmatprep.subr.bf16.mxu1 %v2010_v57 }
  0x5a   :  { %656 = vmatpush1.bf16.msra.mxu0 %v1961_v32  ;;  %471 = vmatprep.mubr.bf16.mxu0 %v2327_v0 }
  0x5b   :  { %657 = vmatprep.subr.bf16.mxu0 %v1973_v33  ;;  %575 = vmatmul.mubr.bf16.vlgmr.msra.gmra.mrb[0].mxu1 %v2389_v30 }
  0x5c   :  { %584 = vmatprep.mubr.bf16.mxu1 %v2327_v0  ;;  %1792 = vmatpush3.bf16.msra.mxu1 %v2011_v58 }
  0x5d   :  { %1793 = vmatprep.subr.bf16.mxu1 %v2012_v59 }
  0x5e   :  { %658 = vmatpush1.bf16.msra.mxu0 %v1971_v36 }
  0x5f   :  { %659 = vmatprep.subr.bf16.mxu0 %v1983_v37 }
  0x60   :  { %1794 = vmatpush3.bf16.msra.mxu1 %v2013_v60 }
  0x61   :  { %472 = vmatmul.mubr.bf16.gmra.mrb[4].mxu0 %v2393_v39  ;;  %1795 = vmatprep.subr.bf16.mxu1 %v2014_v61 }
  0x62   :  { %481 = vmatprep.mubr.bf16.mxu0 %v2327_v0  ;;  %660 = vmatpush1.bf16.msra.mxu0 %v1981_v40 }
  0x63   :  { %661 = vmatprep.subr.bf16.mxu0 %v1993_v41  ;;  %585 = vmatmul.mubr.bf16.gmra.mrb[4].mxu1 %v2393_v39 }
  0x64   :  { %594 = vmatprep.mubr.bf16.mxu1 %v2327_v0  ;;  %1796 = vmatpush3.bf16.msra.mxu1 %v2015_v62 }
  0x65   :  { %1797 = vmatprep.subr.bf16.mxu1 %v2016_v63 }
  0x66   :  { %662 = vmatpush1.bf16.msra.mxu0 %v1991_v42 }
  0x67   :  { %663 = vmatprep.subr.bf16.mxu0 %v1997_v43 }
  0x68   :  { %1798 = vmatpush3.bf16.msra.mxu1 %v2017_v1 }
  0x69   :  { %482 = vmatmul.mubr.bf16.gmra.mrb[8].mxu0 %v1980_v44 }
  0x6a   :  { %491 = vmatprep.mubr.bf16.mxu0 %v2327_v0  ;;  %664 = vmatpush1.bf16.msra.mxu0 %v1995_v45 }
  0x6b   :  { %665 = vmatprep.subr.bf16.mxu0 %v2001_v46  ;;  %595 = vmatmul.mubr.bf16.gmra.mrb[8].mxu1 %v1980_v44 }
  0x6c   :  { %604 = vmatprep.mubr.bf16.mxu1 %v2327_v0 }
  0x6e   :  { %666 = vmatpush1.bf16.msra.mxu0 %v1999_v47 }
  0x6f   :  { %667 = vmatprep.subr.bf16.mxu0 %v2005_v48 }
  0x71   :  { %492 = vmatmul.mubr.bf16.gmra.mrb[12].mxu0 %v1990_v49 }
  0x72   :  { %501 = vmatprep.mubr.bf16.mxu0 %v2327_v0  ;;  %668 = vmatpush1.bf16.msra.mxu0 %v2003_v50 }
  0x73   :  { %669 = vmatprep.subr.bf16.mxu0 %v2009_v51  ;;  %605 = vmatmul.mubr.bf16.gmra.mrb[12].mxu1 %v1990_v49 }
  0x74   :  { %614 = vmatprep.mubr.bf16.mxu1 %v2327_v0 }
  0x76   :  { %670 = vmatpush1.bf16.msra.mxu0 %v2007_v52 }
  0x77   :  { %1871 = vmatprep.subr.bf16.mxu0 %v2421_v2 }
  0x79   :  { %502 = vmatmul.mubr.bf16.gmra.mrb[16].mxu0 %v1994_v53 }
  0x7a   :  { %511 = vmatprep.mubr.bf16.mxu0 %v2327_v0 }
  0x7b   :  { %615 = vmatmul.mubr.bf16.gmra.mrb[16].mxu1 %v1994_v53 }
  0x7c   :  { %624 = vmatprep.mubr.bf16.mxu1 %v2327_v0 }
  0x81   :  { %512 = vmatmul.mubr.bf16.gmra.mrb[20].mxu0 %v1998_v54 }
  0x82   :  { %521 = vmatprep.mubr.bf16.mxu0 %v2327_v0 }
  0x83   :  { %625 = vmatmul.mubr.bf16.gmra.mrb[20].mxu1 %v1998_v54 }
  0x84   :  { %634 = vmatprep.mubr.bf16.mxu1 %v2327_v0 }
  0x89   :  { %522 = vmatmul.mubr.bf16.gmra.mrb[24].mxu0 %v2002_v55 }
  0x8a   :  { %531 = vmatprep.mubr.bf16.mxu0 %v2327_v0 }
  0x8b   :  { %635 = vmatmul.mubr.bf16.gmra.mrb[24].mxu1 %v2002_v55 }
  0x8c   :  { %644 = vmatprep.mubr.bf16.mxu1 %v2327_v0 }
  0x91   :  { %532 = vmatmul.mubr.bf16.gmra.mrb[28].mxu0 %v2006_v56 }
  0x92   :  { %687 = vmatprep.mubr.bf16.mxu0 %v2327_v0 }
  0x93   :  { %645 = vmatmul.mubr.bf16.gmra.mrb[28].mxu1 %v2006_v56 }
  0x99   :  { %688 = vmatmul.mubr.bf16.vlgmr.msra.gmra.mrb[32].mxu0 %v2389_v30 }
  0x9a   :  { %697 = vmatprep.mubr.bf16.mxu0 %v2327_v0  ;;  %1872 = vmatpush3.bf16.msra.mxu0 %v2421_v2 }
  0x9b   :  { %1873 = vmatprep.subr.bf16.mxu0 %v2425_v4 }
  0x9e   :  { %1874 = vmatpush3.bf16.msra.mxu0 %v2425_v4 }
  0x9f   :  { %1875 = vmatprep.subr.bf16.mxu0 %v2429_v7 }
  0xa1   :  { %698 = vmatmul.mubr.bf16.gmra.mrb[36].mxu0 %v2393_v39 }
  0xa2   :  { %707 = vmatprep.mubr.bf16.mxu0 %v2327_v0  ;;  %1876 = vmatpush3.bf16.msra.mxu0 %v2429_v7 }
  0xa3   :  { %1877 = vmatprep.subr.bf16.mxu0 %v2433_v8 }
  0xa6   :  { %1878 = vmatpush3.bf16.msra.mxu0 %v2433_v8 }
  0xa7   :  { %1879 = vmatprep.subr.bf16.mxu0 %v2437_v11 }
  0xa9   :  { %708 = vmatmul.mubr.bf16.gmra.mrb[40].mxu0 %v1980_v44 }
  0xaa   :  { %717 = vmatprep.mubr.bf16.mxu0 %v2327_v0  ;;  %1880 = vmatpush3.bf16.msra.mxu0 %v2437_v11 }
  0xab   :  { %1881 = vmatprep.subr.bf16.mxu0 %v2441_v13 }
  0xae   :  { %1882 = vmatpush3.bf16.msra.mxu0 %v2441_v13 }
  0xaf   :  { %1883 = vmatprep.subr.bf16.mxu0 %v2446_v15 }
  0xb1   :  { %718 = vmatmul.mubr.bf16.gmra.mrb[44].mxu0 %v1990_v49 }
  0xb2   :  { %727 = vmatprep.mubr.bf16.mxu0 %v2327_v0  ;;  %1884 = vmatpush3.bf16.msra.mxu0 %v2446_v15 }
  0xb3   :  { %1885 = vmatprep.subr.bf16.mxu0 %v2450_v16 }
  0xb6   :  { %1886 = vmatpush3.bf16.msra.mxu0 %v2450_v16 }
  0xb9   :  { %728 = vmatmul.mubr.bf16.gmra.mrb[48].mxu0 %v1994_v53 }
  0xba   :  { %737 = vmatprep.mubr.bf16.mxu0 %v2327_v0 }
  0xc1   :  { %738 = vmatmul.mubr.bf16.gmra.mrb[52].mxu0 %v1998_v54 }
  0xc2   :  { %747 = vmatprep.mubr.bf16.mxu0 %v2327_v0 }
  0xc9   :  { %748 = vmatmul.mubr.bf16.gmra.mrb[56].mxu0 %v2002_v55 }
  0xca   :  { %757 = vmatprep.mubr.bf16.mxu0 %v2327_v0  ;;  %v2018_v0 = vld [vmem:[#allocation8 + $0x60] sm:$0xff]  }
  0xcb   :  { %1799 = vmatprep.subr.bf16.mxu1 %v2018_v0 }
  0xcc   :  { %1800 = vmatpush3.bf16.msra.mxu1 %v2019_v3 }
  0xcd   :  { %1801 = vmatprep.subr.bf16.mxu1 %v2020_v5 }
  0xd0   :  { %1802 = vmatpush3.bf16.msra.mxu1 %v2022_v6 }
  0xd1   :  { %758 = vmatmul.mubr.bf16.gmra.mrb[60].mxu0 %v2006_v56  ;;  %1803 = vmatprep.subr.bf16.mxu1 %v2024_v9 }
  0xd4   :  { %1804 = vmatpush3.bf16.msra.mxu1 %v2026_v10 }
  0xd5   :  { %1805 = vmatprep.subr.bf16.mxu1 %v2028_v12 }
  0xd8   :  { %1806 = vmatpush3.bf16.msra.mxu1 %v2030_v14 }
  0xd9   :  { %1903 = vmatprep.subr.bf16.mxu1 %v2421_v2 }
 0x12c   :  { %v2454_v17 = vpop.f32.mrb[0].mxu0 }
 0x12d   :  { %v1719_v18 = vmul.f32 -1.442695, %v2454_v17  ;;  %v2457_v19 = vpop.f32.mrb[1].mxu0 }
 0x12e   :  { %v1720_v20 = vmul.f32 -1.442695, %v2457_v19  ;;  %v2460_v21 = vpop.f32.mrb[2].mxu0  ;;  %v2474_v30 = vpop.f32.mrb[0].mxu1 }
 0x12f   :  { %2034 = vpow2.f32 %v1719_v18  ;;  %v1722_v22 = vmul.f32 -1.442695, %v2460_v21  ;;  %v2463_v23 = vpop.f32.mrb[3].mxu0  ;;  %v2479_v33 = vpop.f32.mrb[1].mxu1  ;;  %v1721_v37 = vmul.f32 -1.442695, %v2474_v30 }
 0x130   :  { %v1723_v24 = vmul.f32 -1.442695, %v2463_v23  ;;  %v2482_v35 = vpop.f32.mrb[2].mxu1 }
 0x131   :  { %2036 = vpow2.f32 %v1722_v22  ;;  %v2485_v38 = vpop.f32.mrb[3].mxu1 }
 0x132   :  { %2038 = vpow2.f32 %v1720_v20 }
 0x133   :  { %2040 = vpow2.f32 %v1723_v24 }
 0x134   :  { %v2466_v25 = vpop.f32.mrb[4].mxu0 }
 0x135   :  { %v1725_v26 = vmul.f32 -1.442695, %v2466_v25  ;;  %v2469_v27 = vpop.f32.mrb[5].mxu0 }
 0x136   :  { %v1726_v28 = vmul.f32 -1.442695, %v2469_v27  ;;  %v2472_v29 = vpop.f32.mrb[6].mxu0  ;;  %v2495_v48 = vpop.f32.mrb[4].mxu1 }
 0x137   :  { %2042 = vpow2.f32 %v1725_v26  ;;  %v1728_v31 = vmul.f32 -1.442695, %v2472_v29  ;;  %v2477_v32 = vpop.f32.mrb[7].mxu0  ;;  %v2500_v52 = vpop.f32.mrb[5].mxu1 }
 0x138   :  { %2044 = vpow2.f32 %v1726_v28  ;;  %v1729_v34 = vmul.f32 -1.442695, %v2477_v32  ;;  %v2502_v54 = vpop.f32.mrb[6].mxu1 }
 0x139   :  { %v2035_v36 = vpop.eup %2034  ;;  %2046 = vpow2.f32 %v1728_v31  ;;  %v2505_v57 = vpop.f32.mrb[7].mxu1 }
 0x13a   :  { %v912_v39 = vadd.f32 1.0, %v2035_v36  ;;  %2048 = vpow2.f32 %v1729_v34 }
 0x13b   :  { %v2037_v40 = vpop.eup %2036 }
 0x13c   :  { %v2039_v41 = vpop.eup %2038  ;;  %2050 = vrcp.f32 %v912_v39  ;;  %v915_v42 = vadd.f32 1.0, %v2037_v40  ;;  %v2487_v43 = vpop.f32.mrb[8].mxu0 }
 0x13d   :  { %v1731_v44 = vmul.f32 -1.442695, %v2487_v43  ;;  %v2490_v45 = vpop.f32.mrb[9].mxu0  ;;  %2052 = vpow2.f32 %v1721_v37  ;;  %v913_v49 = vadd.f32 1.0, %v2039_v41  ;;  %v2041_v53 = vpop.eup %2040 }
 0x13e   :  { %2054 = vrcp.f32 %v915_v42  ;;  %v1732_v46 = vmul.f32 -1.442695, %v2490_v45  ;;  %v2493_v47 = vpop.f32.mrb[10].mxu0  ;;  %v916_v61 = vadd.f32 1.0, %v2041_v53  ;;  %v2514_v10 = vpop.f32.mrb[8].mxu1 }
 0x13f   :  { %v1734_v50 = vmul.f32 -1.442695, %v2493_v47  ;;  %v2498_v51 = vpop.f32.mrb[11].mxu0  ;;  %2056 = vpow2.f32 %v1731_v44  ;;  %v2520_v24 = vpop.f32.mrb[9].mxu1 }
 0x140   :  { %2058 = vpow2.f32 %v1732_v46  ;;  %v1735_v56 = vmul.f32 -1.442695, %v2498_v51  ;;  %v2523_v31 = vpop.f32.mrb[10].mxu1 }
 0x141   :  { %v2043_v55 = vpop.eup %2042  ;;  %2060 = vpow2.f32 %v1734_v50  ;;  %v1724_v50 = vmul.f32 -1.442695, %v2482_v35 }
 0x142   :  { %v2045_v58 = vpop.eup %2044  ;;  %v918_v59 = vadd.f32 1.0, %v2043_v55  ;;  %2062 = vrcp.f32 %v913_v49 }
 0x143   :  { %v2047_v60 = vpop.eup %2046  ;;  %v919_v0 = vadd.f32 1.0, %v2045_v58 }
 0x144   :  { %v2049_v62 = vpop.eup %2048  ;;  %2064 = vrcp.f32 %v918_v59  ;;  %v921_v63 = vadd.f32 1.0, %v2047_v60  ;;  %v2507_v1 = vpop.f32.mrb[12].mxu0 }
 0x145   :  { %2066 = vpow2.f32 %v1735_v56  ;;  %v1737_v3 = vmul.f32 -1.442695, %v2507_v1  ;;  %v2510_v5 = vpop.f32.mrb[13].mxu0  ;;  %v922_v18 = vadd.f32 1.0, %v2049_v62 }
 0x146   :  { %2868 = vst [vmem:[#allocation18_spill] sm:$0xff] %v2510_v5  ;;  %v2051_v6 = vpop.eup %2050  ;;  %2068 = vrcp.f32 %v921_v63  ;;  %v2512_v9 = vpop.f32.mrb[14].mxu0  ;;  %v1738_v28 = vmul.f32 -1.442695, %v2510_v5 }
 0x147   :  { %v2053_v12 = vpop.eup %2052  ;;  %v1056_v14 = vmul.f32 %v2051_v6, %v2454_v17  ;;  %2070 = vrcp.f32 %v916_v61  ;;  %v1740_v20 = vmul.f32 -1.442695, %v2512_v9  ;;  %v2518_v22 = vpop.f32.mrb[15].mxu0 }
 0x148   :  { %2869 = vst [vmem:[#allocation19_spill] sm:$0xff] %v2518_v22  ;;  %v2055_v26 = vpop.eup %2054  ;;  %2072 = vpow2.f32 %v1737_v3  ;;  %v2529_v17 = vpop.f32.mrb[11].mxu1  ;;  %v914_v39 = vadd.f32 1.0, %v2053_v12  ;;  %v1741_v46 = vmul.f32 -1.442695, %v2518_v22 }
 0x149   :  { %v1059_v34 = vmul.f32 %v2055_v26, %v2460_v21  ;;  %2074 = vrcp.f32 %v919_v0  ;;  %v2527_v36 = vmul.f32 %v1056_v14, %v2479_v33  ;;  %v2057_v37 = vpop.eup %2056  ;;  %v2547_v59 = vpop.f32.mrb[12].mxu1  ;;  %v1736_v22 = vmul.f32 -1.442695, %v2523_v31 }
 0x14a   :  { %2076 = vpow2.f32 %v1740_v20  ;;  %v2059_v40 = vpop.eup %2058  ;;  %v924_v41 = vadd.f32 1.0, %v2057_v37  ;;  %2871 = vst [vmem:[#allocation21_spill] sm:$0xff] %v2547_v59  ;;  %v2552_v0 = vpop.f32.mrb[13].mxu1 }
 0x14b   :  { %2078 = vrcp.f32 %v922_v18  ;;  %v2532_v42 = vmul.f32 %v1059_v34, %v2485_v38  ;;  %v2061_v44 = vpop.eup %2060  ;;  %v925_v62 = vadd.f32 1.0, %v2059_v40  ;;  %v2555_v12 = vpop.f32.mrb[14].mxu1 }
 0x14c   :  { %2080 = vpow2.f32 %v1738_v28  ;;  %v2535_v21 = vpop.f32.mrb[16].mxu0  ;;  %v2537_v49 = vpop.eup %2062  ;;  %v927_v33 = vadd.f32 1.0, %v2061_v44 }
 0x14d   :  { %2082 = vrcp.f32 %v924_v41  ;;  %v2542_v55 = vpop.f32.mrb[17].mxu0  ;;  %v1743_v38 = vmul.f32 -1.442695, %v2535_v21 }
 0x14e   :  { %2870 = vst [vmem:[#allocation20_spill] sm:$0xff] %v2542_v55  ;;  %v2065_v56 = vpop.eup %2064  ;;  %2084 = vrcp.f32 %v914_v39  ;;  %v2545_v58 = vpop.f32.mrb[18].mxu0 }
 0x14f   :  { %v2067_v60 = vpop.eup %2066  ;;  %v1062_v61 = vmul.f32 %v2065_v56, %v2466_v25  ;;  %2086 = vrcp.f32 %v927_v33  ;;  %v2550_v63 = vpop.f32.mrb[19].mxu0  ;;  %v1746_v6 = vmul.f32 -1.442695, %v2545_v58 }
 0x150   :  { %2872 = vst [vmem:[#allocation22_spill] sm:$0xff] %v2550_v63  ;;  %v2069_v3 = vpop.eup %2068  ;;  %2088 = vpow2.f32 %v1741_v46  ;;  %v2563_v25 = vpop.f32.mrb[15].mxu1  ;;  %v928_v28 = vadd.f32 1.0, %v2067_v60  ;;  %v1744_v46 = vmul.f32 -1.442695, %v2542_v55 }
 0x151   :  { %v2557_v14 = vpop.eup %2070  ;;  %v1065_v18 = vmul.f32 %v2069_v3, %v2472_v29  ;;  %2090 = vpow2.f32 %v1724_v50  ;;  %v2561_v20 = vmul.f32 %v1062_v61, %v2500_v52  ;;  %v1727_v29 = vmul.f32 -1.442695, %v2495_v48  ;;  %v2583_v60 = vpop.f32.mrb[16].mxu1 }
 0x152   :  { %v2073_v26 = vpop.eup %2072  ;;  %2092 = vpow2.f32 %v1743_v38 }
 0x153   :  { %v2565_v34 = vpop.eup %2074  ;;  %2094 = vrcp.f32 %v925_v62  ;;  %v930_v37 = vadd.f32 1.0, %v2073_v26  ;;  %v2568_v39 = vmul.f32 %v1065_v18, %v2505_v57  ;;  %v1747_v57 = vmul.f32 -1.442695, %v2550_v63 }
 0x154   :  { %v2077_v40 = vpop.eup %2076  ;;  %2096 = vpow2.f32 %v1746_v6  ;;  %v2571_v41 = vpop.f32.mrb[20].mxu0  ;;  %v1730_v62 = vmul.f32 -1.442695, %v2502_v54 }
 0x155   :  { %v2573_v52 = vpop.eup %2078  ;;  %2098 = vrcp.f32 %v930_v37  ;;  %v933_v44 = vadd.f32 1.0, %v2077_v40  ;;  %v2578_v50 = vpop.f32.mrb[21].mxu0  ;;  %v1749_v26 = vmul.f32 -1.442695, %v2571_v41 }
 0x156   :  { %2873 = vst [vmem:[#allocation23_spill] sm:$0xff] %v2578_v50  ;;  %v2081_v56 = vpop.eup %2080  ;;  %2100 = vrcp.f32 %v928_v28  ;;  %v2581_v38 = vpop.f32.mrb[22].mxu0  ;;  %v1750_v16 = vmul.f32 -1.442695, %v2578_v50 }
 0x157   :  { %v2083_v61 = vpop.eup %2082  ;;  %2102 = vrcp.f32 %v933_v44  ;;  %v2586_v3 = vpop.f32.mrb[23].mxu0  ;;  %v931_v40 = vadd.f32 1.0, %v2081_v56 }
 0x158   :  { %2874 = vst [vmem:[#allocation24_spill] sm:$0xff] %v2586_v3  ;;  %v2588_v6 = vpop.eup %2084  ;;  %v1068_v18 = vmul.f32 %v2083_v61, %v2487_v43  ;;  %2104 = vpow2.f32 %v1727_v29  ;;  %v2592_v28 = vpop.f32.mrb[17].mxu1 }
 0x159   :  { %v2087_v37 = vpop.eup %2086  ;;  %2106 = vpow2.f32 %v1744_v46  ;;  %v2594_v33 = vpop.f32.mrb[18].mxu1 }
 0x15a   :  { %v2089_v53 = vpop.eup %2088  ;;  %v1071_v44 = vmul.f32 %v2087_v37, %v2493_v47  ;;  %2108 = vpow2.f32 %v1747_v57  ;;  %v2599_v63 = vmul.f32 %v1068_v18, %v2520_v24  ;;  %v2601_v43 = vpop.f32.mrb[19].mxu1  ;;  %v1752_v18 = vmul.f32 -1.442695, %v2581_v38 }
 0x15b   :  { %v2091_v29 = vpop.eup %2090  ;;  %2110 = vpow2.f32 %v1730_v62  ;;  %v934_v50 = vadd.f32 1.0, %v2089_v53 }
 0x15c   :  { %2875 = vst [vmem:[#allocation25_spill] sm:$0xff] %v2599_v63  ;;  %v2093_v61 = vpop.eup %2092  ;;  %v917_v55 = vadd.f32 1.0, %v2091_v29  ;;  %2112 = vpow2.f32 %v1749_v26  ;;  %v2604_v46 = vmul.f32 %v1071_v44, %v2529_v17  ;;  %v2606_v56 = vpop.f32.mrb[24].mxu0  ;;  %v1733_v29 = vmul.f32 -1.442695, %v2514_v10 }
 0x15d   :  { %2877 = vst [vmem:[#allocation27_spill] sm:$0xff] %v2606_v56  ;;  %v2608_v15 = vpop.eup %2094  ;;  %2114 = vrcp.f32 %v931_v40  ;;  %v936_v47 = vadd.f32 1.0, %v2093_v61  ;;  %v2610_v57 = vpop.f32.mrb[25].mxu0  ;;  %v1753_v63 = vmul.f32 -1.442695, %v2586_v3 }
 0x15e   :  { %2876 = vst [vmem:[#allocation26_spill] sm:$0xff] %v2604_v46  ;;  %v2097_v24 = vpop.eup %2096  ;;  %2116 = vpow2.f32 %v1750_v16  ;;  %v2615_v37 = vpop.f32.mrb[26].mxu0 }
 0x15f   :  { %2878 = vst [vmem:[#allocation28_spill] sm:$0xff] %v2615_v37  ;;  %v2617_v26 = vpop.f32.mrb[20].mxu1  ;;  %v2099_v17 = vpop.eup %2098  ;;  %2118 = vrcp.f32 %v936_v47  ;;  %v939_v44 = vadd.f32 1.0, %v2097_v24 }
 0x160   :  { %v2620_v40 = vpop.f32.mrb[27].mxu0  ;;  %v2622_v61 = vpop.eup %2100  ;;  %v1074_v16 = vmul.f32 %v2099_v17, %v2507_v1  ;;  %2120 = vrcp.f32 %v917_v55 }
 0x161   :  { %v2625_v13 = vpop.f32.mrb[21].mxu1  ;;  %v2103_v62 = vpop.eup %2102  ;;  %2122 = vrcp.f32 %v939_v44 }
 0x162   :  { %v2628_v46 = vpop.f32.mrb[22].mxu1  ;;  %v2105_v47 = vpop.eup %2104  ;;  %v1077_v24 = vmul.f32 %v2103_v62, %v2512_v9  ;;  %2124 = vpow2.f32 %v1752_v18  ;;  %v2633_v5 = vmul.f32 %v1074_v16, %v2552_v0 }
 0x163   :  { %2879 = vst [vmem:[#allocation29_spill] sm:$0xff] %v2628_v46  ;;  %v2635_v1 = vpop.f32.mrb[23].mxu1  ;;  %v2107_v53 = vpop.eup %2106  ;;  %v920_v55 = vadd.f32 1.0, %v2105_v47  ;;  %2126 = vpow2.f32 %v1733_v29 }
 0x164   :  { %2880 = vst [vmem:[#allocation30_spill] sm:$0xff] %v2633_v5  ;;  %v2109_v17 = vpop.eup %2108  ;;  %2128 = vrcp.f32 %v934_v50  ;;  %v2638_v44 = vmul.f32 %v1077_v24, %v2563_v25  ;;  %v2640_v3 = vpop.f32.mrb[28].mxu0  ;;  %v937_v62 = vadd.f32 1.0, %v2107_v53  ;;  %v1755_v24 = vmul.f32 -1.442695, %v2606_v56 }
 0x165   :  { %v2111_v11 = vpop.eup %2110  ;;  %2130 = vpow2.f32 %v1753_v63  ;;  %v2642_v9 = vpop.f32.mrb[29].mxu0  ;;  %v940_v8 = vadd.f32 1.0, %v2109_v17  ;;  %v1758_v53 = vmul.f32 -1.442695, %v2615_v37 }
 0x166   :  { %2881 = vst [vmem:[#allocation31_spill] sm:$0xff] %v2638_v44  ;;  %v2113_v18 = vpop.eup %2112  ;;  %v923_v0 = vadd.f32 1.0, %v2111_v11  ;;  %2132 = vpow2.f32 %v1736_v22  ;;  %v2646_v47 = vpop.f32.mrb[30].mxu0  ;;  %v1739_v44 = vmul.f32 -1.442695, %v2547_v59 }
 0x167   :  { %v2648_v29 = vpop.f32.mrb[24].mxu1  ;;  %v2650_v50 = vpop.eup %2114  ;;  %2134 = vrcp.f32 %v920_v55  ;;  %v942_v25 = vadd.f32 1.0, %v2113_v18  ;;  %v1057_v55 = vmul.f32 %v2537_v49, %v2457_v19 }
 0x168   :  { %v2653_v63 = vpop.f32.mrb[31].mxu0  ;;  %v2117_v46 = vpop.eup %2116  ;;  %2136 = vrcp.f32 %v923_v0  ;;  %v1060_v0 = vmul.f32 %v2557_v14, %v2463_v23 }
 0x169   :  { %v2655_v11 = vpop.f32.mrb[25].mxu1  ;;  %v2119_v22 = vpop.eup %2118  ;;  %2138 = vrcp.f32 %v942_v25  ;;  %v1058_v25 = vmul.f32 %v2588_v6, %v2474_v30 }
 0x16a   :  { %2882 = vst [vmem:[#allocation32_spill] sm:$0xff] %v2655_v11  ;;  %v2658_v16 = vpop.f32.mrb[26].mxu1  ;;  %v2121_v5 = vpop.eup %2120  ;;  %v1080_v18 = vmul.f32 %v2119_v22, %v2535_v21  ;;  %2140 = vrcp.f32 %v937_v62  ;;  %v1756_v11 = vmul.f32 -1.442695, %v2610_v57  ;;  %v943_v21 = vadd.f32 1.0, %v2117_v46 }
 0x16b   :  { %v2664_v56 = vpop.f32.mrb[27].mxu1  ;;  %v2123_v17 = vpop.eup %2122  ;;  %2142 = vpow2.f32 %v1755_v24 }
 0x16c   :  { %2883 = vst [vmem:[#allocation33_spill] sm:$0xff] %v2664_v56  ;;  %v2125_v37 = vpop.eup %2124  ;;  %v1083_v19 = vmul.f32 %v2123_v17, %v2545_v58  ;;  %2144 = vrcp.f32 %v940_v8  ;;  %v2673_v49 = vmul.f32 %v1080_v18, %v2592_v28  ;;  %v689_v62 = vpop.f32.mrb[32].mxu0  ;;  %v1061_v56 = vmul.f32 %v2121_v5, %v2482_v35 }
 0x16d   :  { %v2127_v22 = vpop.eup %2126  ;;  %v945_v59 = vadd.f32 1.0, %v2125_v37  ;;  %2146 = vpow2.f32 %v1758_v53  ;;  %v1105_v23 = vmul.f32 %v1057_v55, %v689_v62  ;;  %v691_v14 = vpop.f32.mrb[33].mxu0  ;;  %v1742_v37 = vmul.f32 -1.442695, %v2555_v12 }
 0x16e   :  { %v2676_v30 = vpop.eup %2128  ;;  %v926_v6 = vadd.f32 1.0, %v2127_v22  ;;  %2148 = vpow2.f32 %v1739_v44  ;;  %v2679_v24 = vmul.f32 %v1083_v19, %v2601_v43  ;;  %v1106_v8 = vmul.f32 %v1058_v25, %v691_v14  ;;  %v693_v58 = vpop.f32.mrb[34].mxu0 }
 0x16f   :  { %v2681_v46 = vpop.f32.mrb[28].mxu1  ;;  %v2131_v28 = vpop.eup %2130  ;;  %2150 = vrcp.f32 %v945_v59  ;;  %v1108_v18 = vmul.f32 %v1060_v0, %v693_v58  ;;  %v1761_v19 = vmul.f32 -1.442695, %v2640_v3 }
 0x170   :  { %v695_v17 = vpop.f32.mrb[35].mxu0  ;;  %v2683_v35 = vpop.f32.mrb[29].mxu1  ;;  %2152 = vrcp.f32 %v926_v6  ;;  %v1180_v44 = vpack.c.bf16 %v2679_v24, %v2673_v49  ;;  %v1063_v6 = vmul.f32 %v2565_v34, %v2469_v27  ;;  %v1066_v27 = vmul.f32 %v2573_v52, %v2477_v32 }
 0x171   :  { %v2133_v5 = vpop.eup %2132  ;;  %v1109_v53 = vmul.f32 %v1061_v56, %v695_v17  ;;  %v2688_v43 = vpop.f32.mrb[30].mxu1  ;;  %2154 = vrcp.f32 %v943_v21  ;;  %v1169_v59 = vpack.c.bf16 %v1108_v18, %v1105_v23  ;;  %v1764_v56 = vmul.f32 -1.442695, %v2646_v47 }
 0x172   :  { %v2135_v55 = vpop.eup %2134  ;;  %v929_v25 = vadd.f32 1.0, %v2133_v5  ;;  %v2691_v0 = vpop.f32.mrb[31].mxu1  ;;  %2156 = vpow2.f32 %v1756_v11  ;;  %v2884_v11 = vpack.c.bf16 %v2532_v42, %v2527_v36  ;;  %v946_v34 = vadd.f32 1.0, %v2131_v28 }
 0x173   :  { %v2137_v62 = vpop.eup %2136  ;;  %v1170_v22 = vpack.c.bf16 %v1109_v53, %v1106_v8  ;;  %1416 = vmatprep.mubr.bf16.mxu1 %v1169_v59  ;;  %v1064_v21 = vmul.f32 %v2135_v55, %v2495_v48 }
 0x174   :  { %v2139_v14 = vpop.eup %2138  ;;  %2158 = vrcp.f32 %v929_v25  ;;  %v699_v23 = vpop.f32.mrb[36].mxu0  ;;  %1417 = vmatmul.mubr.bf16.vlgmr.msra.gmra.mrb[32].mxu1 %v2884_v11 }
 0x175   :  { %v2696_v58 = vpop.eup %2140  ;;  %v1086_v17 = vmul.f32 %v2139_v14, %v2571_v41  ;;  %2160 = vpow2.f32 %v1742_v37  ;;  %1887 = vmatprep.mubr.bf16.mxu0 %v1170_v22  ;;  %v1111_v18 = vmul.f32 %v1063_v6, %v699_v23  ;;  %v701_v5 = vpop.f32.mrb[37].mxu0  ;;  %1911 = vmatpush3.bf16.msra.mxu1 %v2421_v2  ;;  %v1067_v41 = vmul.f32 %v2137_v62, %v2502_v54 }
 0x176   :  { %v2143_v8 = vpop.eup %2142  ;;  %2162 = vpow2.f32 %v1761_v19  ;;  %v1112_v36 = vmul.f32 %v1064_v21, %v701_v5  ;;  %v703_v42 = vpop.f32.mrb[38].mxu0  ;;  %1904 = vmatprep.subr.bf16.mxu1 %v2425_v4  ;;  %v1745_v2 = vmul.f32 -1.442695, %v2583_v60  ;;  %v1748_v6 = vmul.f32 -1.442695, %v2594_v33 }
 0x177   :  { %v2706_v48 = vpop.eup %2144  ;;  %v948_v37 = vadd.f32 1.0, %v2143_v8  ;;  %v2710_v53 = vmul.f32 %v1086_v17, %v2625_v13  ;;  %2164 = vpow2.f32 %v1764_v56  ;;  %v1114_v32 = vmul.f32 %v1066_v27, %v703_v42  ;;  %v705_v52 = vpop.f32.mrb[39].mxu0 }
 0x178   :  { %v2147_v55 = vpop.eup %2146  ;;  %v1115_v19 = vmul.f32 %v1067_v41, %v705_v52  ;;  %v1759_v13 = vmul.f32 -1.442695, %v2620_v40  ;;  %v1069_v17 = vmul.f32 %v2608_v15, %v2490_v45  ;;  %v1762_v23 = vmul.f32 -1.442695, %v2642_v9 }
 0x179   :  { %v2149_v28 = vpop.eup %2148  ;;  %2166 = vrcp.f32 %v948_v37  ;;  %v951_v25 = vadd.f32 1.0, %v2147_v55  ;;  %v1172_v62 = vpack.c.bf16 %v1114_v32, %v1111_v18  ;;  %1912 = vmatpush3.bf16.msra.mxu1 %v2425_v4  ;;  %v1072_v45 = vmul.f32 %v2622_v61, %v2498_v51 }
 0x17a   :  { %v2151_v59 = vpop.eup %2150  ;;  %2168 = vrcp.f32 %v946_v34  ;;  %v932_v54 = vadd.f32 1.0, %v2149_v28  ;;  %v1173_v56 = vpack.c.bf16 %v1115_v19, %v1112_v36  ;;  %1905 = vmatprep.subr.bf16.mxu1 %v2429_v7  ;;  %v2885_v34 = vpack.c.bf16 %v2568_v39, %v2561_v20  ;;  %v2886_v39 = vld [vmem:[#allocation13_spill] sm:$0xff] }
 0x17b   :  { %v2153_v22 = vpop.eup %2152  ;;  %v1089_v14 = vmul.f32 %v2151_v59, %v2581_v38  ;;  %2170 = vrcp.f32 %v951_v25  ;;  %1424 = vmatprep.mubr.bf16.mxu1 %v1172_v62  ;;  %v1751_v38 = vmul.f32 -1.442695, %v2617_v26  ;;  %v1765_v51 = vmul.f32 -1.442695, %v2653_v63 }
 0x17c   :  { %v2719_v21 = vpop.eup %2154  ;;  %2172 = vrcp.f32 %v932_v54  ;;  %v1070_v4 = vmul.f32 %v2153_v22, %v2514_v10  ;;  %v709_v27 = vpop.f32.mrb[40].mxu0  ;;  %1425 = vmatmul.mubr.bf16.gmra.mrb[36].mxu1 %v2885_v34  ;;  %1888 = vmatmul.mubr.bf16.vlgmr.msra.gmra.mrb[64].mxu0 %v1173_v56  ;;  %v1757_v59 = vmul.f32 -1.442695, %v2648_v29  ;;  %v2889_v22 = vld [vmem:[#allocation18_spill] sm:$0xff] }
 0x17d   :  { %v2724_v11 = vpop.eup %2156  ;;  %2174 = vpow2.f32 %v1745_v2  ;;  %v2729_v8 = vmul.f32 %v1089_v14, %v2635_v1  ;;  %v1117_v18 = vmul.f32 %v1069_v17, %v709_v27  ;;  %v711_v5 = vpop.f32.mrb[41].mxu0  ;;  %1913 = vmatpush3.bf16.msra.mxu1 %v2429_v7  ;;  %v1075_v14 = vmul.f32 %v2650_v50, %v2889_v22 }
 0x17e   :  { %v2159_v15 = vpop.eup %2158  ;;  %2176 = vpow2.f32 %v1759_v13  ;;  %v1118_v37 = vmul.f32 %v1070_v4, %v711_v5  ;;  %v713_v20 = vpop.f32.mrb[42].mxu0  ;;  %1906 = vmatprep.subr.bf16.mxu1 %v2886_v39  ;;  %v2888_v13 = vld [vmem:[#allocation14_spill] sm:$0xff]  ;;  %v1760_v17 = vmul.f32 -1.442695, %v2658_v16  ;;  %v2891_v4 = vld [vmem:[#allocation19_spill] sm:$0xff]  ;;  %v2895_v5 = vld [vmem:[#allocation28_spill] sm:$0xff] }
 0x17f   :  { %v2161_v10 = vpop.eup %2160  ;;  %v1073_v41 = vmul.f32 %v2159_v15, %v2523_v31  ;;  %2178 = vpow2.f32 %v1748_v6  ;;  %v1183_v1 = vpack.c.bf16 %v2729_v8, %v2710_v53  ;;  %v1120_v61 = vmul.f32 %v1072_v45, %v713_v20  ;;  %v715_v55 = vpop.f32.mrb[43].mxu0  ;;  %v2887_v31 = vld [vmem:[#allocation29_spill] sm:$0xff]  ;;  %v2890_v6 = vld [vmem:[#allocation27_spill] sm:$0xff]  ;;  %v2892_v15 = vld [vmem:[#allocation26_spill] sm:$0xff] }
 0x180   :  { %v2163_v36 = vpop.eup %2162  ;;  %v935_v42 = vadd.f32 1.0, %v2161_v10  ;;  %2180 = vpow2.f32 %v1762_v23  ;;  %v1754_v28 = vmul.f32 -1.442695, %v2887_v31  ;;  %v1763_v27 = vmul.f32 -1.442695, %v2681_v46  ;;  %v2893_v45 = vld [vmem:[#allocation25_spill] sm:$0xff] }
 0x181   :  { %v954_v32 = vadd.f32 1.0, %v2163_v36  ;;  %2182 = vpow2.f32 %v1751_v38  ;;  %v1121_v7 = vmul.f32 %v1073_v41, %v715_v55  ;;  %v2165_v52 = vpop.eup %2164  ;;  %v1175_v25 = vpack.c.bf16 %v1120_v61, %v1117_v18  ;;  %1914 = vmatpush3.bf16.msra.mxu1 %v2886_v39  ;;  %v2896_v41 = vld [vmem:[#allocation32_spill] sm:$0xff]  ;;  %v2897_v36 = vld [vmem:[#allocation21_spill] sm:$0xff]  ;;  %v2898_v61 = vld [vmem:[#allocation15_spill] sm:$0xff] }
 0x182   :  { %2184 = vrcp.f32 %v935_v42  ;;  %v957_v19 = vadd.f32 1.0, %v2165_v52  ;;  %1907 = vmatprep.subr.bf16.mxu1 %v2888_v13  ;;  %v1078_v38 = vmul.f32 %v2676_v30, %v2891_v4  ;;  %v2894_v18 = vpack.c.bf16 %v2892_v15, %v2893_v45  ;;  %v2901_v4 = vld [vmem:[#allocation20_spill] sm:$0xff] }
 0x183   :  { %v2167_v2 = vpop.eup %2166  ;;  %2186 = vrcp.f32 %v954_v32  ;;  %v1176_v54 = vpack.c.bf16 %v1121_v7, %v1118_v37  ;;  %1432 = vmatprep.mubr.bf16.mxu1 %v1175_v25  ;;  %v2899_v7 = vld [vmem:[#allocation33_spill] sm:$0xff] }
 0x184   :  { %v2746_v62 = vpop.eup %2168  ;;  %v1092_v56 = vmul.f32 %v2167_v2, %v2890_v6  ;;  %2188 = vpow2.f32 %v1765_v51  ;;  %v719_v34 = vpop.f32.mrb[44].mxu0  ;;  %1433 = vmatmul.mubr.bf16.gmra.mrb[40].mxu1 %v2894_v18 }
 0x185   :  { %v2171_v23 = vpop.eup %2170  ;;  %2190 = vrcp.f32 %v957_v19  ;;  %1891 = vmatprep.mubr.bf16.mxu0 %v1176_v54  ;;  %v1123_v20 = vmul.f32 %v1075_v14, %v719_v34  ;;  %v721_v39 = vpop.f32.mrb[45].mxu0  ;;  %1915 = vmatpush3.bf16.msra.mxu1 %v2888_v13  ;;  %v1766_v19 = vmul.f32 -1.442695, %v2688_v43 }
 0x186   :  { %v2173_v50 = vpop.eup %2172  ;;  %v1095_v10 = vmul.f32 %v2171_v23, %v2895_v5  ;;  %2192 = vpow2.f32 %v1754_v28  ;;  %v2760_v37 = vmul.f32 %v1092_v56, %v2896_v41  ;;  %v723_v51 = vpop.f32.mrb[46].mxu0  ;;  %1908 = vmatprep.subr.bf16.mxu1 %v2898_v61  ;;  %v949_v56 = vadd.f32 1.0, %v2724_v11  ;;  %v2903_v5 = vld [vmem:[#allocation30_spill] sm:$0xff] }
 0x187   :  { %v2175_v30 = vpop.eup %2174  ;;  %v1076_v42 = vmul.f32 %v2173_v50, %v2897_v36  ;;  %2194 = vpow2.f32 %v1757_v59  ;;  %v1126_v28 = vmul.f32 %v1078_v38, %v723_v51  ;;  %v725_v25 = vpop.f32.mrb[47].mxu0  ;;  %v1081_v38 = vmul.f32 %v2696_v58, %v2901_v4  ;;  %v2902_v50 = vld [vmem:[#allocation31_spill] sm:$0xff]  ;;  %v2905_v41 = vld [vmem:[#allocation22_spill] sm:$0xff]  ;;  %v2906_v51 = vld [vmem:[#allocation17_spill] sm:$0xff] }
 0x188   :  { %v2177_v55 = vpop.eup %2176  ;;  %v938_v32 = vadd.f32 1.0, %v2175_v30  ;;  %2196 = vpow2.f32 %v1760_v17  ;;  %v2766_v52 = vmul.f32 %v1095_v10, %v2899_v7  ;;  %v2900_v17 = vld [vmem:[#allocation16_spill] sm:$0xff]  ;;  %v2904_v10 = vpack.c.bf16 %v2902_v50, %v2903_v5 }
 0x189   :  { %v2179_v2 = vpop.eup %2178  ;;  %2198 = vpow2.f32 %v1763_v27  ;;  %v1124_v54 = vmul.f32 %v1076_v42, %v721_v39  ;;  %v1178_v14 = vpack.c.bf16 %v1126_v28, %v1123_v20  ;;  %1916 = vmatpush3.bf16.msra.mxu1 %v2898_v61  ;;  %v952_v15 = vadd.f32 1.0, %v2177_v55 }
 0x18a   :  { %v2181_v13 = vpop.eup %2180  ;;  %2200 = vrcp.f32 %v938_v32  ;;  %v941_v22 = vadd.f32 1.0, %v2179_v2  ;;  %v1186_v59 = vpack.c.bf16 %v2766_v52, %v2760_v37  ;;  %1909 = vmatprep.subr.bf16.mxu1 %v2900_v17  ;;  %v1084_v20 = vmul.f32 %v2706_v48, %v2905_v41 }
 0x18b   :  { %v2183_v6 = vpop.eup %2182  ;;  %1440 = vmatprep.mubr.bf16.mxu1 %v1178_v14 }
 0x18c   :  { %v2185_v23 = vpop.eup %2184  ;;  %2202 = vrcp.f32 %v941_v22  ;;  %v944_v27 = vadd.f32 1.0, %v2183_v6  ;;  %v729_v18 = vpop.f32.mrb[48].mxu0  ;;  %1441 = vmatmul.mubr.bf16.gmra.mrb[44].mxu1 %v2904_v10 }
 0x18d   :  { %v2187_v34 = vpop.eup %2186  ;;  %v1079_v45 = vmul.f32 %v2185_v23, %v2555_v12  ;;  %2204 = vpow2.f32 %v1766_v19  ;;  %v1129_v58 = vmul.f32 %v1081_v38, %v729_v18  ;;  %v731_v30 = vpop.f32.mrb[49].mxu0  ;;  %1917 = vmatpush3.bf16.msra.mxu1 %v2900_v17  ;;  %v2907_v17 = vld [vmem:[#allocation23_spill] sm:$0xff] }
 0x18e   :  { %v2189_v11 = vpop.eup %2188  ;;  %v1098_v39 = vmul.f32 %v2187_v34, %v2640_v3  ;;  %2206 = vrcp.f32 %v944_v27  ;;  %v733_v42 = vpop.f32.mrb[50].mxu0  ;;  %1910 = vmatprep.subr.bf16.mxu1 %v2906_v51  ;;  %v1087_v23 = vmul.f32 %v2719_v21, %v2907_v17  ;;  %v2908_v34 = vld [vmem:[#allocation24_spill] sm:$0xff] }
 0x18f   :  { %v2191_v36 = vpop.eup %2190  ;;  %2208 = vrcp.f32 %v949_v56  ;;  %v1127_v12 = vmul.f32 %v1079_v45, %v725_v25  ;;  %v1132_v48 = vmul.f32 %v1084_v20, %v733_v42  ;;  %v735_v7 = vpop.f32.mrb[51].mxu0  ;;  %v955_v56 = vadd.f32 1.0, %v2181_v13 }
 0x190   :  { %v2193_v61 = vpop.eup %2192  ;;  %v1101_v55 = vmul.f32 %v2191_v36, %v2646_v47  ;;  %v2787_v32 = vmul.f32 %v1098_v39, %v2683_v35  ;;  %2210 = vrcp.f32 %v952_v15  ;;  %v958_v38 = vadd.f32 1.0, %v2189_v11 }
 0x191   :  { %v2195_v3 = vpop.eup %2194  ;;  %v947_v28 = vadd.f32 1.0, %v2193_v61  ;;  %v1179_v2 = vpack.c.bf16 %v1127_v12, %v1124_v54  ;;  %v1181_v25 = vpack.c.bf16 %v1132_v48, %v1129_v58  ;;  %1918 = vmatpush3.bf16.msra.mxu1 %v2906_v51  ;;  %v1090_v15 = vmul.f32 %v2746_v62, %v2908_v34 }
 0x192   :  { %v2197_v19 = vpop.eup %2196  ;;  %v950_v22 = vadd.f32 1.0, %v2195_v3  ;;  %v2790_v14 = vmul.f32 %v1101_v55, %v2691_v0 }
 0x193   :  { %v2199_v6 = vpop.eup %2198  ;;  %2212 = vrcp.f32 %v947_v28  ;;  %v953_v47 = vadd.f32 1.0, %v2197_v19  ;;  %1892 = vmatmul.mubr.bf16.gmra.mrb[68].mxu0 %v1179_v2  ;;  %1448 = vmatprep.mubr.bf16.mxu1 %v1181_v25 }
 0x194   :  { %v2201_v35 = vpop.eup %2200  ;;  %2214 = vrcp.f32 %v950_v22  ;;  %v956_v4 = vadd.f32 1.0, %v2199_v6  ;;  %v1189_v54 = vpack.c.bf16 %v2790_v14, %v2787_v32  ;;  %v739_v27 = vpop.f32.mrb[52].mxu0  ;;  %1449 = vmatmul.mubr.bf16.gmra.mrb[48].mxu1 %v1180_v44 }
 0x195   :  { %v1082_v0 = vmul.f32 %v2201_v35, %v2583_v60  ;;  %2216 = vrcp.f32 %v953_v47  ;;  %v1135_v21 = vmul.f32 %v1087_v23, %v739_v27  ;;  %v741_v45 = vpop.f32.mrb[53].mxu0 }
 0x196   :  { %v2203_v13 = vpop.eup %2202  ;;  %2218 = vrcp.f32 %v955_v56  ;;  %v743_v10 = vpop.f32.mrb[54].mxu0 }
 0x197   :  { %v2205_v18 = vpop.eup %2204  ;;  %v1085_v50 = vmul.f32 %v2203_v13, %v2594_v33  ;;  %v1130_v5 = vmul.f32 %v1082_v0, %v731_v30  ;;  %2220 = vrcp.f32 %v956_v4  ;;  %v1138_v41 = vmul.f32 %v1090_v15, %v743_v10  ;;  %v745_v20 = vpop.f32.mrb[55].mxu0 }
 0x198   :  { %v2207_v60 = vpop.eup %2206  ;;  %v959_v11 = vadd.f32 1.0, %v2205_v18  ;;  %2222 = vrcp.f32 %v958_v38 }
 0x199   :  { %v2209_v39 = vpop.eup %2208  ;;  %v1088_v49 = vmul.f32 %v2207_v60, %v2617_v26  ;;  %v1133_v24 = vmul.f32 %v1085_v50, %v735_v7  ;;  %v1184_v44 = vpack.c.bf16 %v1138_v41, %v1135_v21 }
 0x19a   :  { %2224 = vrcp.f32 %v959_v11  ;;  %v2211_v62 = vpop.eup %2210  ;;  %v1093_v12 = vmul.f32 %v2209_v39, %v2610_v57 }
 0x19b   :  { %v1182_v58 = vpack.c.bf16 %v1133_v24, %v1130_v5  ;;  %v1136_v36 = vmul.f32 %v1088_v49, %v741_v45  ;;  %1456 = vmatprep.mubr.bf16.mxu1 %v1184_v44  ;;  %v1096_v51 = vmul.f32 %v2211_v62, %v2620_v40 }
 0x19c   :  { %v749_v30 = vpop.f32.mrb[56].mxu0  ;;  %1457 = vmatmul.mubr.bf16.gmra.mrb[52].mxu1 %v1183_v1 }
 0x19d   :  { %v2213_v33 = vpop.eup %2212  ;;  %v1141_v61 = vmul.f32 %v1093_v12, %v749_v30  ;;  %v751_v55 = vpop.f32.mrb[57].mxu0 }
 0x19e   :  { %v2215_v42 = vpop.eup %2214  ;;  %v1091_v26 = vmul.f32 %v2213_v33, %v2887_v31  ;;  %v753_v3 = vpop.f32.mrb[58].mxu0 }
 0x19f   :  { %v2217_v48 = vpop.eup %2216  ;;  %v1094_v7 = vmul.f32 %v2215_v42, %v2648_v29  ;;  %v1144_v2 = vmul.f32 %v1096_v51, %v753_v3  ;;  %v755_v19 = vpop.f32.mrb[59].mxu0 }
 0x1a0   :  { %v1097_v57 = vmul.f32 %v2217_v48, %v2658_v16  ;;  %v1139_v28 = vmul.f32 %v1091_v26, %v745_v20  ;;  %v2219_v22 = vpop.eup %2218 }
 0x1a1   :  { %v1142_v25 = vmul.f32 %v1094_v7, %v751_v55  ;;  %v2221_v53 = vpop.eup %2220  ;;  %v1187_v1 = vpack.c.bf16 %v1144_v2, %v1141_v61  ;;  %v1099_v31 = vmul.f32 %v2219_v22, %v2642_v9 }
 0x1a2   :  { %v1185_v8 = vpack.c.bf16 %v1139_v28, %v1136_v36  ;;  %v1145_v6 = vmul.f32 %v1097_v57, %v755_v19  ;;  %v2223_v40 = vpop.eup %2222  ;;  %v1100_v29 = vmul.f32 %v2221_v53, %v2681_v46 }
 0x1a3   :  { %1464 = vmatprep.mubr.bf16.mxu1 %v1187_v1  ;;  %v1102_v16 = vmul.f32 %v2223_v40, %v2653_v63 }
 0x1a4   :  { %v2225_v56 = vpop.eup %2224  ;;  %v1188_v47 = vpack.c.bf16 %v1145_v6, %v1142_v25  ;;  %v759_v35 = vpop.f32.mrb[60].mxu0  ;;  %1465 = vmatmul.mubr.bf16.gmra.mrb[56].mxu1 %v1186_v59 }
 0x1a5   :  { %v1147_v17 = vmul.f32 %v1099_v31, %v759_v35  ;;  %v761_v23 = vpop.f32.mrb[61].mxu0  ;;  %v1103_v4 = vmul.f32 %v2225_v56, %v2688_v43 }
 0x1a6   :  { %v1148_v0 = vmul.f32 %v1100_v29, %v761_v23  ;;  %v763_v38 = vpop.f32.mrb[62].mxu0 }
 0x1a7   :  { %v1150_v27 = vmul.f32 %v1102_v16, %v763_v38  ;;  %v765_v13 = vpop.f32.mrb[63].mxu0 }
 0x1a8   :  { %v1151_v9 = vmul.f32 %v1103_v4, %v765_v13 }
 0x1a9   :  { %v1190_v34 = vpack.c.bf16 %v1150_v27, %v1147_v17 }
 0x1aa   :  { %v1191_v15 = vpack.c.bf16 %v1151_v9, %v1148_v0 }
 0x1ab   :  { %1472 = vmatprep.mubr.bf16.mxu1 %v1190_v34 }
 0x1ac   :  { %1473 = vmatmul.mubr.bf16.gmra.mrb[60].mxu1 %v1189_v54 }
 0x1ad   :  { %1895 = vmatprep.mubr.bf16.mxu1 %v1182_v58 }
 0x1b4   :  { %1896 = vmatmul.mubr.bf16.vlgmr.msra.gmra.mrb[64].mxu1 %v1185_v8 }
 0x1b5   :  { %1899 = vmatprep.mubr.bf16.mxu1 %v1188_v47 }
 0x1bc   :  { %1900 = vmatmul.mubr.bf16.gmra.mrb[68].mxu1 %v1191_v15 }
 0x247   :  { %v1807_v63 = vpop.f32.mrb[32].mxu1 }
 0x248   :  { %v1808_v46 = vpop.f32.mrb[33].mxu1 }
 0x249   :  { %v1809_v37 = vadd.f32 %v1808_v46, %v1807_v63  ;;  %v1810_v43 = vpop.f32.mrb[34].mxu1 }
 0x24a   :  { %v1811_v52 = vpop.f32.mrb[35].mxu1 }
 0x24b   :  { %v1812_v59 = vadd.f32 %v1811_v52, %v1810_v43 }
 0x24f   :  { %v1813_v21 = vpop.f32.mrb[36].mxu1  ;;  %v1889_v45 = vpop.f32.mrb[64].mxu0 }
 0x250   :  { %v1814_v18 = vpop.f32.mrb[37].mxu1  ;;  %v1515_v50 = vpop.f32.mrb[65].mxu0 }
 0x251   :  { %v1815_v5 = vadd.f32 %v1814_v18, %v1813_v21  ;;  %v1516_v10 = vadd.f32 %v1809_v37, %v1515_v50  ;;  %v1816_v60 = vpop.f32.mrb[38].mxu1  ;;  %v1890_v11 = vpop.f32.mrb[66].mxu0 }
 0x252   :  { %v1817_v32 = vpop.f32.mrb[39].mxu1  ;;  %v1518_v14 = vpop.f32.mrb[67].mxu0 }
 0x253   :  { %v1524_v54 = vadd.f32 %v1889_v45, %v1815_v5  ;;  %1629 = vst [vmem:[#allocation9] sm:$0xff] %v1516_v10  ;;  %v1818_v41 = vadd.f32 %v1817_v32, %v1816_v60  ;;  %v1519_v20 = vadd.f32 %v1812_v59, %v1518_v14 }
 0x255   :  { %1631 = vst [vmem:[#allocation9 + $0x10] sm:$0xff] %v1524_v54  ;;  %v1527_v39 = vadd.f32 %v1890_v11, %v1818_v41  ;;  %1630 = vst [vmem:[#allocation9 + $0x8] sm:$0xff] %v1519_v20 }
 0x257   :  { %1632 = vst [vmem:[#allocation9 + $0x18] sm:$0xff] %v1527_v39  ;;  %v1819_v49 = vpop.f32.mrb[40].mxu1 }
 0x258   :  { %v1820_v24 = vpop.f32.mrb[41].mxu1 }
 0x259   :  { %v1821_v44 = vadd.f32 %v1820_v24, %v1819_v49  ;;  %v1822_v62 = vpop.f32.mrb[42].mxu1 }
 0x25a   :  { %v1823_v58 = vpop.f32.mrb[43].mxu1 }
 0x25b   :  { %v1824_v36 = vadd.f32 %v1823_v58, %v1822_v62 }
 0x25f   :  { %v1825_v12 = vpop.f32.mrb[44].mxu1 }
 0x260   :  { %v1826_v33 = vpop.f32.mrb[45].mxu1 }
 0x261   :  { %v1827_v30 = vadd.f32 %v1826_v33, %v1825_v12  ;;  %v1828_v42 = vpop.f32.mrb[46].mxu1 }
 0x262   :  { %v1829_v51 = vpop.f32.mrb[47].mxu1 }
 0x263   :  { %v1830_v26 = vadd.f32 %v1829_v51, %v1828_v42 }
 0x266   :  { %v1893_v61 = vpop.f32.mrb[68].mxu0 }
 0x267   :  { %v1540_v55 = vadd.f32 %v1893_v61, %v1827_v30  ;;  %v1531_v48 = vpop.f32.mrb[69].mxu0  ;;  %v1831_v57 = vpop.f32.mrb[48].mxu1 }
 0x268   :  { %v1532_v7 = vadd.f32 %v1821_v44, %v1531_v48  ;;  %v1894_v3 = vpop.f32.mrb[70].mxu0  ;;  %v1832_v19 = vpop.f32.mrb[49].mxu1 }
 0x269   :  { %1635 = vst [vmem:[#allocation9 + $0x30] sm:$0xff] %v1540_v55  ;;  %v1543_v28 = vadd.f32 %v1894_v3, %v1830_v26  ;;  %v1534_v2 = vpop.f32.mrb[71].mxu0  ;;  %v1833_v25 = vadd.f32 %v1832_v19, %v1831_v57  ;;  %v1834_v53 = vpop.f32.mrb[50].mxu1 }
 0x26a   :  { %1633 = vst [vmem:[#allocation9 + $0x20] sm:$0xff] %v1532_v7  ;;  %v1535_v22 = vadd.f32 %v1824_v36, %v1534_v2  ;;  %v1835_v8 = vpop.f32.mrb[51].mxu1 }
 0x26b   :  { %1636 = vst [vmem:[#allocation9 + $0x38] sm:$0xff] %v1543_v28  ;;  %v1836_v1 = vadd.f32 %v1835_v8, %v1834_v53 }
 0x26c   :  { %1634 = vst [vmem:[#allocation9 + $0x28] sm:$0xff] %v1535_v22 }
 0x26f   :  { %v1837_v6 = vpop.f32.mrb[52].mxu1 }
 0x270   :  { %v1838_v40 = vpop.f32.mrb[53].mxu1 }
 0x271   :  { %v1839_v56 = vadd.f32 %v1838_v40, %v1837_v6  ;;  %v1840_v31 = vpop.f32.mrb[54].mxu1 }
 0x272   :  { %v1841_v47 = vpop.f32.mrb[55].mxu1 }
 0x273   :  { %v1842_v29 = vadd.f32 %v1841_v47, %v1840_v31 }
 0x277   :  { %v1843_v35 = vpop.f32.mrb[56].mxu1 }
 0x278   :  { %v1844_v16 = vpop.f32.mrb[57].mxu1 }
 0x279   :  { %v1845_v17 = vadd.f32 %v1844_v16, %v1843_v35  ;;  %v1846_v23 = vpop.f32.mrb[58].mxu1 }
 0x27a   :  { %v1847_v4 = vpop.f32.mrb[59].mxu1 }
 0x27b   :  { %v1848_v0 = vadd.f32 %v1847_v4, %v1846_v23 }
 0x27f   :  { %v1849_v38 = vpop.f32.mrb[60].mxu1 }
 0x280   :  { %v1850_v27 = vpop.f32.mrb[61].mxu1 }
 0x281   :  { %v1851_v13 = vadd.f32 %v1850_v27, %v1849_v38  ;;  %v1852_v9 = vpop.f32.mrb[62].mxu1 }
 0x282   :  { %v1853_v34 = vpop.f32.mrb[63].mxu1 }
 0x283   :  { %v1854_v15 = vadd.f32 %v1853_v34, %v1852_v9 }
 0x287   :  { %v1897_v63 = vpop.f32.mrb[64].mxu1 }
 0x288   :  { %v1556_v46 = vadd.f32 %v1897_v63, %v1839_v56  ;;  %v1547_v37 = vpop.f32.mrb[65].mxu1 }
 0x289   :  { %v1548_v43 = vadd.f32 %v1833_v25, %v1547_v37  ;;  %v1898_v52 = vpop.f32.mrb[66].mxu1 }
 0x28a   :  { %1639 = vst [vmem:[#allocation9 + $0x50] sm:$0xff] %v1556_v46  ;;  %v1559_v59 = vadd.f32 %v1898_v52, %v1842_v29  ;;  %v1550_v21 = vpop.f32.mrb[67].mxu1 }
 0x28b   :  { %1637 = vst [vmem:[#allocation9 + $0x40] sm:$0xff] %v1548_v43  ;;  %v1551_v45 = vadd.f32 %v1836_v1, %v1550_v21 }
 0x28c   :  { %1640 = vst [vmem:[#allocation9 + $0x58] sm:$0xff] %v1559_v59 }
 0x28d   :  { %1638 = vst [vmem:[#allocation9 + $0x48] sm:$0xff] %v1551_v45 }
 0x28f   :  { %v1901_v18 = vpop.f32.mrb[68].mxu1 }
 0x290   :  { %v1572_v50 = vadd.f32 %v1901_v18, %v1851_v13  ;;  %v1563_v5 = vpop.f32.mrb[69].mxu1 }
 0x291   :  { %v1564_v10 = vadd.f32 %v1845_v17, %v1563_v5  ;;  %v1902_v60 = vpop.f32.mrb[70].mxu1 }
 0x292   :  { %1643 = vst [vmem:[#allocation9 + $0x70] sm:$0xff] %v1572_v50  ;;  %v1575_v11 = vadd.f32 %v1902_v60, %v1854_v15  ;;  %v1566_v32 = vpop.f32.mrb[71].mxu1 }
 0x293   :  { %1641 = vst [vmem:[#allocation9 + $0x60] sm:$0xff] %v1564_v10  ;;  %v1567_v14 = vadd.f32 %v1848_v0, %v1566_v32 }
 0x294   :  { %1644 = vst [vmem:[#allocation9 + $0x78] sm:$0xff] %v1575_v11 }
 0x295   :  { %1642 = vst [vmem:[#allocation9 + $0x68] sm:$0xff] %v1567_v14 }
 0x296   :  { %2303 = shalt.err (!%p2300_p0)
}
 0x297   :  { %s2304_s27 = scalar_lea.hbm %s2838_s3, 2048 }
 0x298   :  { %p2305_p1 = scmp.ne.s32.totalorder %s2838_s3, %s2304_s27  ;;  %p2308_p2 = scmp.lt.u32.totalorder %s2304_s27, %s2838_s3 }
 0x29a   :  { %p2310_p3 = pnand %p2308_p2, %p2305_p1 }
 0x29c   :  { %2313 = shalt.err (!%p2310_p3)
}
 0x29d   :  { %s2329_s5 = smov 128   ;;  %s2330_s6 = smov 8  }
 0x29e   :  { %1656 = dma.vmem_to_hbm [thread:$0]  %s1651_s23, 2048, %s2838_s3, [#allocation5], %s2329_s5, %s2329_s5, %s2330_s6  }
 0x29f   :  { %2318 = dma.done.wait [#allocation5], 2048  }
 0x2a0   :  { %2319 = vsyncadd [#allocation5], 4294965248 }
 0x2a1   :  { %1660 = vsyncpa [#allocation4], 1 }
 0x2a2   :  { %1661 = vsyncpa [#allocation7], 1 }
 0x2a3   :  { %1662 = vsyncpa [#allocation5], 1 }

</bundles_post_ra>
